<compile_context>
chip_gen: v7x
topology: tpu7x:2x2x1
jax: 0.10.0
libtpu: 0.0.40
codegen_flags: <defaults>
</compile_context>

<pallas_src>
import functools

import jax
import jax.numpy as jnp
from jax import lax
from jax.experimental import pallas as pl
from jax.experimental.pallas import tpu as pltpu

BN_EPS = 1e-5


def _round_up(x, m):
    return (x + m - 1) // m * m


def _conv_acc(x_ref, w_ref, *, kh, kw, in_w, m_img):
    """Valid conv for one image as KH*KW shifted matmuls on the MXU.

    x_ref: (1, M_in_pad, Cin) channel-last flattened image (+ KW-1 zero rows).
    w_ref: (KH*KW, Cin, CP)   per-tap weights, Cout zero-padded to CP.
    Returns (m_img, CP) f32: output row p = oh*W + ow; columns ow >= OW are
    width-wrap garbage handled by the caller (masked / sliced away).
    """
    acc = jnp.dot(x_ref[0, pl.ds(0, m_img), :], w_ref[0],
                  preferred_element_type=jnp.float32)
    for t in range(1, kh * kw):
        i, j = divmod(t, kw)
        xs = x_ref[0, pl.ds(i * in_w + j, m_img), :]          # (m_img, Cin), static
        acc = acc + jnp.dot(xs, w_ref[t], preferred_element_type=jnp.float32)
    return acc


def conv_stats_kernel(x_ref, w_ref, mask_ref, sum_ref, sq_ref, *,
                      kh, kw, in_w, m_img):
    """Per-image conv + masked per-channel sum / sum-of-squares (MXU row-vec matmul).

    mask_ref: (1, m_img) 1.0 where the output column is valid (ow < OW).
    sum_ref / sq_ref: (1, 1, CP).
    """
    acc = _conv_acc(x_ref, w_ref, kh=kh, kw=kw, in_w=in_w, m_img=m_img)
    m = mask_ref[...]                                          # (1, m_img)
    sum_ref[0] = jnp.dot(m, acc, preferred_element_type=jnp.float32)       # (1, CP)
    sq_ref[0] = jnp.dot(m, acc * acc, preferred_element_type=jnp.float32)  # (1, CP)


def conv_bn_elu_kernel(x_ref, w_ref, scale_ref, shift_ref, o_ref, *,
                       kh, kw, in_w, m_img):
    """Per-image conv (recomputed) + folded BN affine + ELU, lane-dense store."""
    acc = _conv_acc(x_ref, w_ref, kh=kh, kw=kw, in_w=in_w, m_img=m_img)
    z = acc * scale_ref[...] + shift_ref[...]                  # (m_img, CP)
    o_ref[0] = jnp.where(z > 0, z, jnp.expm1(z)).astype(o_ref.dtype)


def conv_block(x, conv_w, gamma, beta):
    """x: (N, Cin, H, W) f32; conv_w: (Cout, Cin, KH, KW); gamma/beta: (Cout,)."""
    n, cin, h, w = x.shape
    cout, _, kh, kw = conv_w.shape
    oh, ow = h - kh + 1, w - kw + 1

    cp = _round_up(max(cout, 128), 128)        # lane-dense padded channel dim
    m_img = oh * w                             # rows per image (incl. wrap cols)
    m_in_pad = _round_up(h * w + kw - 1, 8)    # input rows + tap-shift headroom

    # NCHW -> channel-last flat (N, H*W, Cin), zero-padded rows for the tap shifts.
    x_flat = x.transpose(0, 2, 3, 1).reshape(n, h * w, cin).astype(jnp.float32)
    x_flat = jnp.pad(x_flat, ((0, 0), (0, m_in_pad - h * w), (0, 0)))

    # (Cout, Cin, KH, KW) -> (KH*KW, Cin, CP), Cout zero-padded to CP.
    w_taps = conv_w.transpose(2, 3, 1, 0).reshape(kh * kw, cin, cout)
    w_taps = jnp.pad(w_taps, ((0, 0), (0, 0), (0, cp - cout))).astype(jnp.float32)

    # Valid-column mask for BN statistics (excludes width-wrap garbage columns).
    col = jnp.arange(m_img, dtype=jnp.int32) % w
    mask = (col < ow).astype(jnp.float32).reshape(1, m_img)

    # Pass 1: per-image masked partial statistics only (no conv intermediate in HBM).
    stats_kern = functools.partial(conv_stats_kernel, kh=kh, kw=kw, in_w=w,
                                   m_img=m_img)
    s1, s2 = pl.pallas_call(
        stats_kern,
        out_shape=(
            jax.ShapeDtypeStruct((n, 1, cp), jnp.float32),
            jax.ShapeDtypeStruct((n, 1, cp), jnp.float32),
        ),
        grid=(n,),
        in_specs=[
            pl.BlockSpec((1, m_in_pad, cin), lambda b: (b, 0, 0)),
            pl.BlockSpec((kh * kw, cin, cp), lambda b: (0, 0, 0)),
            pl.BlockSpec((1, m_img), lambda b: (0, 0)),
        ],
        out_specs=(
            pl.BlockSpec((1, 1, cp), lambda b: (b, 0, 0)),
            pl.BlockSpec((1, 1, cp), lambda b: (b, 0, 0)),
        ),
        compiler_params=pltpu.CompilerParams(
            dimension_semantics=("parallel",),
            vmem_limit_bytes=32 * 1024 * 1024),
    )(x_flat, w_taps, mask)

    # Finalize train-mode batch statistics and fold BN into (scale, shift).
    # Padded channels have zero weights -> zero stats, zero gamma -> scale/shift = 0.
    count = jnp.float32(n * oh * ow)
    mean = jnp.sum(s1, axis=0) / count                          # (1, CP)
    var = jnp.maximum(jnp.sum(s2, axis=0) / count - mean * mean, 0.0)
    rstd = lax.rsqrt(var + BN_EPS)
    gamma_p = jnp.pad(gamma.astype(jnp.float32), (0, cp - cout)).reshape(1, cp)
    beta_p = jnp.pad(beta.astype(jnp.float32), (0, cp - cout)).reshape(1, cp)
    scale = gamma_p * rstd
    shift = beta_p - mean * scale

    # Pass 2: recompute the (tiny) conv per image, apply BN affine + ELU, write the
    # final lane-dense output once.
    fused_kern = functools.partial(conv_bn_elu_kernel, kh=kh, kw=kw, in_w=w,
                                   m_img=m_img)
    out_pad = pl.pallas_call(
        fused_kern,
        out_shape=jax.ShapeDtypeStruct((n, m_img, cp), jnp.float32),
        grid=(n,),
        in_specs=[
            pl.BlockSpec((1, m_in_pad, cin), lambda b: (b, 0, 0)),
            pl.BlockSpec((kh * kw, cin, cp), lambda b: (0, 0, 0)),
            pl.BlockSpec((1, cp), lambda b: (0, 0)),
            pl.BlockSpec((1, cp), lambda b: (0, 0)),
        ],
        out_specs=pl.BlockSpec((1, m_img, cp), lambda b: (b, 0, 0)),
        compiler_params=pltpu.CompilerParams(
            dimension_semantics=("parallel",),
            vmem_limit_bytes=32 * 1024 * 1024),
    )(x_flat, w_taps, scale, shift)

    # Drop wrap columns and channel padding, return NCHW.
    out = out_pad.reshape(n, oh, w, cp)[:, :, :ow, :cout]
    return out.transpose(0, 3, 1, 2)


def conv_block_reference(x, conv_w, gamma, beta):
    """Pure-JAX reference: conv2d(valid) + train-mode BN + ELU."""
    y = lax.conv_general_dilated(
        x, conv_w, window_strides=(1, 1), padding="VALID",
        dimension_numbers=("NCHW", "OIHW", "NCHW"))
    mean = jnp.mean(y, axis=(0, 2, 3), keepdims=True)
    var = jnp.mean((y - mean) ** 2, axis=(0, 2, 3), keepdims=True)
    y_hat = (y - mean) * lax.rsqrt(var + BN_EPS)
    z = y_hat * gamma.reshape(1, -1, 1, 1) + beta.reshape(1, -1, 1, 1)
    return jnp.where(z > 0, z, jnp.expm1(z))


if __name__ == "__main__":
    key = jax.random.PRNGKey(0)
    kx, kw_key = jax.random.split(key)

    # Small shapes consistent with ConvBlock(in_chs=4, out_chs=8, kernel_size=3).
    N, Cin, H, W = 2, 4, 16, 16
    Cout, KH, KW = 8, 3, 3

    x = jax.random.normal(kx, (N, Cin, H, W), dtype=jnp.float32)
    fan_in = Cin * KH * KW
    bound = (1.0 / fan_in) ** 0.5
    conv_w = jax.random.uniform(kw_key, (Cout, Cin, KH, KW),
                                dtype=jnp.float32, minval=-bound, maxval=bound)
    # BatchNorm2d default init: weight=1, bias=0.
    gamma = jnp.ones((Cout,), dtype=jnp.float32)
    beta = jnp.zeros((Cout,), dtype=jnp.float32)

    out = jax.block_until_ready(conv_block(x, conv_w, gamma, beta))
    ref = jax.block_until_ready(conv_block_reference(x, conv_w, gamma, beta))

    assert out.shape == (N, Cout, H - KH + 1, W - KW + 1), out.shape
    assert jnp.allclose(out, ref, atol=1e-4, rtol=1e-4), float(jnp.max(jnp.abs(out - ref)))
    print("KERNEL_OK")
</pallas_src>

<mosaic_0001>
module attributes {stable_mosaic.version = 11 : i64} {
  func.func @conv_stats_kernel(%arg0: i32, %arg1: memref<1x264x4xf32, #tpu.memory_space<vmem>>, %arg2: memref<9x4x128xf32, #tpu.memory_space<vmem>>, %arg3: memref<1x224xf32, #tpu.memory_space<vmem>>, %arg4: memref<1x1x128xf32, #tpu.memory_space<vmem>>, %arg5: memref<1x1x128xf32, #tpu.memory_space<vmem>>) attributes {dimension_semantics = [#tpu.dimension_semantics<parallel>], iteration_bounds = array<i64: 2>, scalar_prefetch = 0 : i64, scratch_operands = 0 : i64, tpu.core_type = #tpu.core_type<tc>, window_params = [{transform_indices = @transform_0, window_bounds = array<i64: 1, 264, 4>}, {pipeline_mode = #tpu.pipeline_mode<synchronous>, transform_indices = @transform_1, window_bounds = array<i64: 9, 4, 128>}, {pipeline_mode = #tpu.pipeline_mode<synchronous>, transform_indices = @transform_2, window_bounds = array<i64: 1, 224>}, {transform_indices = @transform_3, window_bounds = array<i64: 1, 1, 128>}, {transform_indices = @transform_4, window_bounds = array<i64: 1, 1, 128>}]} {
    %c0 = arith.constant 0 : index
    %c0_0 = arith.constant 0 : index
    %c0_1 = arith.constant 0 : index
    %0 = vector.load %arg1[%c0, %c0_0, %c0_1] : memref<1x264x4xf32, #tpu.memory_space<vmem>>, vector<1x224x4xf32>
    %1 = vector.shape_cast %0 : vector<1x224x4xf32> to vector<224x4xf32>
    %c0_2 = arith.constant 0 : index
    %c0_3 = arith.constant 0 : index
    %c0_4 = arith.constant 0 : index
    %2 = vector.load %arg2[%c0_2, %c0_3, %c0_4] : memref<9x4x128xf32, #tpu.memory_space<vmem>>, vector<1x4x128xf32>
    %3 = vector.shape_cast %2 : vector<1x4x128xf32> to vector<4x128xf32>
    %cst = arith.constant dense<0.000000e+00> : vector<224x128xf32>
    %4 = tpu.matmul %1, %3, %cst {dimension_numbers = #tpu.dot_dimension_numbers<[1], [0], [0], [1], [0, 0, 1, 1], [], []>} : vector<224x4xf32>, vector<4x128xf32>, vector<224x128xf32> -> vector<224x128xf32>
    %c0_5 = arith.constant 0 : index
    %c1 = arith.constant 1 : index
    %c0_6 = arith.constant 0 : index
    %5 = vector.load %arg1[%c0_5, %c1, %c0_6] : memref<1x264x4xf32, #tpu.memory_space<vmem>>, vector<1x224x4xf32>
    %6 = vector.shape_cast %5 : vector<1x224x4xf32> to vector<224x4xf32>
    %c1_7 = arith.constant 1 : index
    %c0_8 = arith.constant 0 : index
    %c0_9 = arith.constant 0 : index
    %7 = vector.load %arg2[%c1_7, %c0_8, %c0_9] : memref<9x4x128xf32, #tpu.memory_space<vmem>>, vector<1x4x128xf32>
    %8 = vector.shape_cast %7 : vector<1x4x128xf32> to vector<4x128xf32>
    %cst_10 = arith.constant dense<0.000000e+00> : vector<224x128xf32>
    %9 = tpu.matmul %6, %8, %cst_10 {dimension_numbers = #tpu.dot_dimension_numbers<[1], [0], [0], [1], [0, 0, 1, 1], [], []>} : vector<224x4xf32>, vector<4x128xf32>, vector<224x128xf32> -> vector<224x128xf32>
    %10 = arith.addf %4, %9 : vector<224x128xf32>
    %c0_11 = arith.constant 0 : index
    %c2 = arith.constant 2 : index
    %c0_12 = arith.constant 0 : index
    %11 = vector.load %arg1[%c0_11, %c2, %c0_12] : memref<1x264x4xf32, #tpu.memory_space<vmem>>, vector<1x224x4xf32>
    %12 = vector.shape_cast %11 : vector<1x224x4xf32> to vector<224x4xf32>
    %c2_13 = arith.constant 2 : index
    %c0_14 = arith.constant 0 : index
    %c0_15 = arith.constant 0 : index
    %13 = vector.load %arg2[%c2_13, %c0_14, %c0_15] : memref<9x4x128xf32, #tpu.memory_space<vmem>>, vector<1x4x128xf32>
    %14 = vector.shape_cast %13 : vector<1x4x128xf32> to vector<4x128xf32>
    %cst_16 = arith.constant dense<0.000000e+00> : vector<224x128xf32>
    %15 = tpu.matmul %12, %14, %cst_16 {dimension_numbers = #tpu.dot_dimension_numbers<[1], [0], [0], [1], [0, 0, 1, 1], [], []>} : vector<224x4xf32>, vector<4x128xf32>, vector<224x128xf32> -> vector<224x128xf32>
    %16 = arith.addf %10, %15 : vector<224x128xf32>
    %c0_17 = arith.constant 0 : index
    %c16 = arith.constant 16 : index
    %c0_18 = arith.constant 0 : index
    %17 = vector.load %arg1[%c0_17, %c16, %c0_18] : memref<1x264x4xf32, #tpu.memory_space<vmem>>, vector<1x224x4xf32>
    %18 = vector.shape_cast %17 : vector<1x224x4xf32> to vector<224x4xf32>
    %c3 = arith.constant 3 : index
    %c0_19 = arith.constant 0 : index
    %c0_20 = arith.constant 0 : index
    %19 = vector.load %arg2[%c3, %c0_19, %c0_20] : memref<9x4x128xf32, #tpu.memory_space<vmem>>, vector<1x4x128xf32>
    %20 = vector.shape_cast %19 : vector<1x4x128xf32> to vector<4x128xf32>
    %cst_21 = arith.constant dense<0.000000e+00> : vector<224x128xf32>
    %21 = tpu.matmul %18, %20, %cst_21 {dimension_numbers = #tpu.dot_dimension_numbers<[1], [0], [0], [1], [0, 0, 1, 1], [], []>} : vector<224x4xf32>, vector<4x128xf32>, vector<224x128xf32> -> vector<224x128xf32>
    %22 = arith.addf %16, %21 : vector<224x128xf32>
    %c0_22 = arith.constant 0 : index
    %c17 = arith.constant 17 : index
    %c0_23 = arith.constant 0 : index
    %23 = vector.load %arg1[%c0_22, %c17, %c0_23] : memref<1x264x4xf32, #tpu.memory_space<vmem>>, vector<1x224x4xf32>
    %24 = vector.shape_cast %23 : vector<1x224x4xf32> to vector<224x4xf32>
    %c4 = arith.constant 4 : index
    %c0_24 = arith.constant 0 : index
    %c0_25 = arith.constant 0 : index
    %25 = vector.load %arg2[%c4, %c0_24, %c0_25] : memref<9x4x128xf32, #tpu.memory_space<vmem>>, vector<1x4x128xf32>
    %26 = vector.shape_cast %25 : vector<1x4x128xf32> to vector<4x128xf32>
    %cst_26 = arith.constant dense<0.000000e+00> : vector<224x128xf32>
    %27 = tpu.matmul %24, %26, %cst_26 {dimension_numbers = #tpu.dot_dimension_numbers<[1], [0], [0], [1], [0, 0, 1, 1], [], []>} : vector<224x4xf32>, vector<4x128xf32>, vector<224x128xf32> -> vector<224x128xf32>
    %28 = arith.addf %22, %27 : vector<224x128xf32>
    %c0_27 = arith.constant 0 : index
    %c18 = arith.constant 18 : index
    %c0_28 = arith.constant 0 : index
    %29 = vector.load %arg1[%c0_27, %c18, %c0_28] : memref<1x264x4xf32, #tpu.memory_space<vmem>>, vector<1x224x4xf32>
    %30 = vector.shape_cast %29 : vector<1x224x4xf32> to vector<224x4xf32>
    %c5 = arith.constant 5 : index
    %c0_29 = arith.constant 0 : index
    %c0_30 = arith.constant 0 : index
    %31 = vector.load %arg2[%c5, %c0_29, %c0_30] : memref<9x4x128xf32, #tpu.memory_space<vmem>>, vector<1x4x128xf32>
    %32 = vector.shape_cast %31 : vector<1x4x128xf32> to vector<4x128xf32>
    %cst_31 = arith.constant dense<0.000000e+00> : vector<224x128xf32>
    %33 = tpu.matmul %30, %32, %cst_31 {dimension_numbers = #tpu.dot_dimension_numbers<[1], [0], [0], [1], [0, 0, 1, 1], [], []>} : vector<224x4xf32>, vector<4x128xf32>, vector<224x128xf32> -> vector<224x128xf32>
    %34 = arith.addf %28, %33 : vector<224x128xf32>
    %c0_32 = arith.constant 0 : index
    %c32 = arith.constant 32 : index
    %c0_33 = arith.constant 0 : index
    %35 = vector.load %arg1[%c0_32, %c32, %c0_33] : memref<1x264x4xf32, #tpu.memory_space<vmem>>, vector<1x224x4xf32>
    %36 = vector.shape_cast %35 : vector<1x224x4xf32> to vector<224x4xf32>
    %c6 = arith.constant 6 : index
    %c0_34 = arith.constant 0 : index
    %c0_35 = arith.constant 0 : index
    %37 = vector.load %arg2[%c6, %c0_34, %c0_35] : memref<9x4x128xf32, #tpu.memory_space<vmem>>, vector<1x4x128xf32>
    %38 = vector.shape_cast %37 : vector<1x4x128xf32> to vector<4x128xf32>
    %cst_36 = arith.constant dense<0.000000e+00> : vector<224x128xf32>
    %39 = tpu.matmul %36, %38, %cst_36 {dimension_numbers = #tpu.dot_dimension_numbers<[1], [0], [0], [1], [0, 0, 1, 1], [], []>} : vector<224x4xf32>, vector<4x128xf32>, vector<224x128xf32> -> vector<224x128xf32>
    %40 = arith.addf %34, %39 : vector<224x128xf32>
    %c0_37 = arith.constant 0 : index
    %c33 = arith.constant 33 : index
    %c0_38 = arith.constant 0 : index
    %41 = vector.load %arg1[%c0_37, %c33, %c0_38] : memref<1x264x4xf32, #tpu.memory_space<vmem>>, vector<1x224x4xf32>
    %42 = vector.shape_cast %41 : vector<1x224x4xf32> to vector<224x4xf32>
    %c7 = arith.constant 7 : index
    %c0_39 = arith.constant 0 : index
    %c0_40 = arith.constant 0 : index
    %43 = vector.load %arg2[%c7, %c0_39, %c0_40] : memref<9x4x128xf32, #tpu.memory_space<vmem>>, vector<1x4x128xf32>
    %44 = vector.shape_cast %43 : vector<1x4x128xf32> to vector<4x128xf32>
    %cst_41 = arith.constant dense<0.000000e+00> : vector<224x128xf32>
    %45 = tpu.matmul %42, %44, %cst_41 {dimension_numbers = #tpu.dot_dimension_numbers<[1], [0], [0], [1], [0, 0, 1, 1], [], []>} : vector<224x4xf32>, vector<4x128xf32>, vector<224x128xf32> -> vector<224x128xf32>
    %46 = arith.addf %40, %45 : vector<224x128xf32>
    %c0_42 = arith.constant 0 : index
    %c34 = arith.constant 34 : index
    %c0_43 = arith.constant 0 : index
    %47 = vector.load %arg1[%c0_42, %c34, %c0_43] : memref<1x264x4xf32, #tpu.memory_space<vmem>>, vector<1x224x4xf32>
    %48 = vector.shape_cast %47 : vector<1x224x4xf32> to vector<224x4xf32>
    %c8 = arith.constant 8 : index
    %c0_44 = arith.constant 0 : index
    %c0_45 = arith.constant 0 : index
    %49 = vector.load %arg2[%c8, %c0_44, %c0_45] : memref<9x4x128xf32, #tpu.memory_space<vmem>>, vector<1x4x128xf32>
    %50 = vector.shape_cast %49 : vector<1x4x128xf32> to vector<4x128xf32>
    %cst_46 = arith.constant dense<0.000000e+00> : vector<224x128xf32>
    %51 = tpu.matmul %48, %50, %cst_46 {dimension_numbers = #tpu.dot_dimension_numbers<[1], [0], [0], [1], [0, 0, 1, 1], [], []>} : vector<224x4xf32>, vector<4x128xf32>, vector<224x128xf32> -> vector<224x128xf32>
    %52 = arith.addf %46, %51 : vector<224x128xf32>
    %c0_47 = arith.constant 0 : index
    %c0_48 = arith.constant 0 : index
    %53 = vector.load %arg3[%c0_47, %c0_48] : memref<1x224xf32, #tpu.memory_space<vmem>>, vector<1x224xf32>
    %cst_49 = arith.constant dense<0.000000e+00> : vector<1x128xf32>
    %54 = tpu.matmul %53, %52, %cst_49 {dimension_numbers = #tpu.dot_dimension_numbers<[1], [0], [0], [1], [0, 0, 1, 1], [], []>} : vector<1x224xf32>, vector<224x128xf32>, vector<1x128xf32> -> vector<1x128xf32>
    %c0_50 = arith.constant 0 : index
    %c0_51 = arith.constant 0 : index
    %c0_52 = arith.constant 0 : index
    %55 = vector.load %arg4[%c0_50, %c0_51, %c0_52] : memref<1x1x128xf32, #tpu.memory_space<vmem>>, vector<1x1x128xf32>
    %56 = vector.shape_cast %55 : vector<1x1x128xf32> to vector<1x128xf32>
    %57 = vector.shape_cast %54 : vector<1x128xf32> to vector<1x1x128xf32>
    tpu.vector_store %arg4[%c0_50, %c0_51, %c0_52], %57 {strides = array<i32>} : memref<1x1x128xf32, #tpu.memory_space<vmem>>, vector<1x1x128xf32>,
    %58 = arith.mulf %52, %52 : vector<224x128xf32>
    %cst_53 = arith.constant dense<0.000000e+00> : vector<1x128xf32>
    %59 = tpu.matmul %53, %58, %cst_53 {dimension_numbers = #tpu.dot_dimension_numbers<[1], [0], [0], [1], [0, 0, 1, 1], [], []>} : vector<1x224xf32>, vector<224x128xf32>, vector<1x128xf32> -> vector<1x128xf32>
    %c0_54 = arith.constant 0 : index
    %c0_55 = arith.constant 0 : index
    %c0_56 = arith.constant 0 : index
    %60 = vector.load %arg5[%c0_54, %c0_55, %c0_56] : memref<1x1x128xf32, #tpu.memory_space<vmem>>, vector<1x1x128xf32>
    %61 = vector.shape_cast %60 : vector<1x1x128xf32> to vector<1x128xf32>
    %62 = vector.shape_cast %59 : vector<1x128xf32> to vector<1x1x128xf32>
    tpu.vector_store %arg5[%c0_54, %c0_55, %c0_56], %62 {strides = array<i32>} : memref<1x1x128xf32, #tpu.memory_space<vmem>>, vector<1x1x128xf32>,
    return
  }
  func.func @transform_0(%arg0: i32) -> (i32, i32, i32) {
    %c0_i32 = arith.constant 0 : i32
    %c0_i32_0 = arith.constant 0 : i32
    %c0_i32_1 = arith.constant 0 : i32
    return %arg0, %c0_i32, %c0_i32_0 : i32, i32, i32
  }
  func.func @transform_1(%arg0: i32) -> (i32, i32, i32) {
    %c0_i32 = arith.constant 0 : i32
    %c0_i32_0 = arith.constant 0 : i32
    %c0_i32_1 = arith.constant 0 : i32
    %c0_i32_2 = arith.constant 0 : i32
    return %c0_i32, %c0_i32_0, %c0_i32_1 : i32, i32, i32
  }
  func.func @transform_2(%arg0: i32) -> (i32, i32) {
    %c0_i32 = arith.constant 0 : i32
    %c0_i32_0 = arith.constant 0 : i32
    %c0_i32_1 = arith.constant 0 : i32
    return %c0_i32, %c0_i32_0 : i32, i32
  }
  func.func @transform_3(%arg0: i32) -> (i32, i32, i32) {
    %c0_i32 = arith.constant 0 : i32
    %c0_i32_0 = arith.constant 0 : i32
    %c0_i32_1 = arith.constant 0 : i32
    return %arg0, %c0_i32, %c0_i32_0 : i32, i32, i32
  }
  func.func @transform_4(%arg0: i32) -> (i32, i32, i32) {
    %c0_i32 = arith.constant 0 : i32
    %c0_i32_0 = arith.constant 0 : i32
    %c0_i32_1 = arith.constant 0 : i32
    return %arg0, %c0_i32, %c0_i32_0 : i32, i32, i32
  }
}

</mosaic_0001>

<bundles_post_ra>
// kernel: tpu_custom_call.1
= control target key start
LH: loop header
LB: loop body
LE: loop exit
PB: predicated region body
PF: predicated region fallthrough
CT: control target
= control target key end

     0   :  { %10 = vsyncpa [#allocation3], 0  ;;  %s6147_s0 = inlined_call_operand.vmem [shape: f32[2,264,4], index: 0, kind: input, shape index: {}]   ;;  %s6148_s1 = inlined_call_operand.vmem [shape: f32[9,4,128], index: 1, kind: input, shape index: {}]   ;;  %s6149_s2 = inlined_call_operand.vmem [shape: f32[1,224], index: 2, kind: input, shape index: {}]   ;;  %s6150_s3 = inlined_call_operand.hbm [shape: f32[2,1,128], index: 3, kind: output, shape index: {0}]   ;;  %s6151_s4 = inlined_call_operand.hbm [shape: f32[2,1,128], index: 4, kind: output, shape index: {1}]  }
   0x1   :  { %12 = vsyncpa [#allocation3 + $0x1], 0 }
   0x2   :  { %13 = vsyncpa [#allocation5], 0 }
   0x3   :  { %15 = vsyncpa [#allocation5 + $0x1], 0  ;;  %s5012_s15 = smov 0   ;;  %s5014_s16 = smov 0  }
   0x4   :  { %s5016_s17 = smov 0   ;;  %s5018_s18 = smov 0  }
   0x5 LB: > { %s5033_s19 = sadd.s32 4294967295, %s4982_s18   ;;  %s3597_s20 = sadd.s32 4294967294, %s4982_s18   ;;  %s4982_s18 = sphi %s5018_s18, %s6220_s18   ;;  %s4978_s17 = sphi %s5016_s17, %s6219_s17   ;;  %s4974_s16 = sphi %s5014_s16, %s6218_s16   ;;  %s4970_s15 = sphi %s5012_s15, %s6217_s15  }
   0x6   : > { %s5037_s21 = sadd.s32 1, %s4982_s18   ;;  %s96_s22 = sadd.s32 1, %s4978_s17 }
   0x7   : > { %s93_s23 = ssub.s32 %s4982_s18, %s5037_s21  ;;  %p106_p0 = scmp.ne.s32.totalorder %s4978_s17, %s4974_s16 }
   0x8   : > { %p94_p1 = scmp.eq.s32.totalorder %s93_s23, 0  ;;  %p107_p2 = scmp.eq.s32.totalorder %s5033_s19, 1 }
   0x9   : > { %p112_p3 = scmp.ne.s32.totalorder %s4974_s16, %s4970_s15  ;;  %p113_p4 = scmp.eq.s32.totalorder %s3597_s20, 1 }
   0xa   : > { %s5048_s24 = scalar_select %p94_p1, %s4978_s17, %s96_s22  }
   0xb   : > { %p5050_p5 = por %p107_p2, %p106_p0  ;;  %p5054_p6 = por %p113_p4, %p112_p3 }
   0xc   : > { %p3600_p7 = scmp.ge.s32.totalorder %s4982_s18, 1  ;;  %p171_p8 = scmp.lt.s32.totalorder %s4982_s18, 3 }
   0xe   : > { %p172_p9 = pnand %p3600_p7, %p171_p8 }
  0x10   : > { %175 = sbr.rel (%p172_p9) target bundleno = 810 (0x32a), region = 32 }
  0x17   : > { %vm349_vm0 = vcmask 1043456   ;;  %v3721_v0 = vld [vmem:[%s6148_s1 + $0x10] sm:$0xf]  ;;  %v3602_v1 = vld [vmem:[%s6148_s1 + $0x4] sm:$0xf]  ;;  %p200_p10 = scmp.lt.s32.totalorder %s5033_s19, 1 }
  0x18   : > { %4314 = vmatprep.subr.msk.mxu0 %vm349_vm0, %v3721_v0  ;;  %4138 = vmatprep.subr.msk.mxu1 %vm349_vm0, %v3602_v1  ;;  %v3751_v2 = vld [vmem:[%s6148_s1 + $0x14] sm:$0xf]  ;;  %v233_v3 = vld [vmem:[%s6148_s1] sm:$0xf]  ;;  %vm264_vm1 = vcmask 31744   ;;  %vm3311_vm2 = vcmask 785408  }
  0x19   : > { %4315 = vmatpush3.msk.msra.mxu0 %vm349_vm0, %v3721_v0  ;;  %4139 = vmatpush3.msk.msra.mxu1 %vm349_vm0, %v3602_v1  ;;  %s201_s9 = scalar_select %p200_p10, %s5033_s19, 1  ;;  %v5099_v9 = vld [vmem:[%s6148_s1 + $0x18] sm:$0xf]  ;;  %v5104_v10 = vld [vmem:[%s6148_s1 + $0x8] sm:$0xf] }
  0x1a   : > { %4358 = vmatprep.subr.msk.mxu0 %vm349_vm0, %v3751_v2  ;;  %4182 = vmatprep.subr.msk.mxu1 %vm349_vm0, %v233_v3  ;;  %v5312_v42 = vld [vmem:[%s6148_s1 + $0x1c] sm:$0xf]  ;;  %v5317_v43 = vld [vmem:[%s6148_s1 + $0xc] sm:$0xf]  ;;  %s3873_s12 = sshll.u32 %s5033_s19, 4  ;;  %s4985_s27 = smov [#allocation2]  }
  0x1b   : > { %s4842_s10 = smul.u32 264, %s201_s9  ;;  %s6063_s9 = sand.u32 1, %s4974_s16  }
  0x1c   : > { %s6074_s20 = scalar_lea.hbm %s6150_s3, %s3873_s12  ;;  %s3485_s22 = scalar_lea.sflag [#allocation3], %s6063_s9 }
  0x1d   : > { %s5083_s13 = scalar_lea.vmem %s6147_s0, %s4842_s10  ;;  %s193_s10 = scalar_lea.vmem [#allocation2], %s6063_s9 }
  0x1e   : > { %v234_v4 = vld [vmem:[%s5083_s13 + $0x1] sm:$0xff]  ;;  %v1550_v5 = vld [vmem:[%s5083_s13 + $0x11] sm:$0xff]  ;;  %v235_v6 = vld [vmem:[%s5083_s13 + $0x9] sm:$0xff]  ;;  %s3501_s11 = sshll.u32 %s193_s10, 4  ;;  %s4892_s28 = sshll.u32 %s4985_s27, 4  ;;  %s6067_s11 = int_to_ptr.vmem [resolvable:$true] %s3501_s11  ;;  %s4893_s28 = int_to_ptr.vmem [resolvable:$false] %s4892_s28 }
  0x1f   : > { %4140 = vmatprep.mubr.msk.f32.mxu1 %vm264_vm1, %v234_v4  ;;  %4316 = vmatprep.mubr.msk.f32.mxu0 %vm264_vm1, %v1550_v5  ;;  %v1551_v7 = vld [vmem:[%s5083_s13 + $0x19] sm:$0xff]  ;;  %v5092_v8 = vld [vmem:[%s5083_s13 + $0x21] sm:$0xff]  ;;  %v5109_v11 = vld [vmem:[%s5083_s13 + $0x29] sm:$0xff]  ;;  %s4888_s23 = scalar_lea.vmem %s6067_s11, 16  ;;  %s4894_s29 = scalar_lea.vmem %s4893_s28, 32 }
  0x20   : > { %4141 = vmatmul.mubr.msk.f32.vlgmr.msra.gmra.mrb[0].mxu1 %vm264_vm1, %v235_v6  ;;  %4317 = vmatmul.mubr.msk.f32.vlgmr.msra.gmra.mrb[0].mxu0 %vm264_vm1, %v1551_v7  ;;  %v5114_v12 = vld [vmem:[%s5083_s13 + $0x31] sm:$0xff]  ;;  %v5129_v13 = vld [vmem:[%s5083_s13 + $0x39] sm:$0xff]  ;;  %v5132_v14 = vld [vmem:[%s5083_s13 + $0x41] sm:$0xff]  ;;  %p4889_p11 = scmp.ne.s32.totalorder %s6067_s11, %s4888_s23  ;;  %p4895_p0 = scmp.lt.s32.totalorder %s6067_s11, %s4893_s28 }
  0x21   : > { %4359 = vmatpush3.msk.msra.mxu0 %vm349_vm0, %v3751_v2  ;;  %4143 = vmatprep.mubr.msk.f32.mxu1 %vm264_vm1, %v1550_v5  ;;  %v5143_v15 = vld [vmem:[%s5083_s13 + $0x49] sm:$0xff]  ;;  %v5146_v16 = vld [vmem:[%s5083_s13 + $0x51] sm:$0xff]  ;;  %v5157_v17 = vld [vmem:[%s5083_s13 + $0x59] sm:$0xff]  ;;  %p4896_p1 = scmp.lt.s32.totalorder %s4894_s29, %s4888_s23 }
  0x22   : > { %4319 = vmatprep.mubr.msk.f32.mxu0 %vm264_vm1, %v5092_v8  ;;  %4183 = vmatpush3.msk.msra.mxu1 %vm349_vm0, %v233_v3  ;;  %6175 = vst [vmem:[#allocation8_spill] sm:$0xff] %v5146_v16  ;;  %6176 = vst [vmem:[#allocation9_spill] sm:$0xff] %v5157_v17  ;;  %v5160_v18 = vld [vmem:[%s5083_s13 + $0x61] sm:$0xff]  ;;  %v5171_v19 = vld [vmem:[%s5083_s13 + $0x69] sm:$0xff]  ;;  %p4890_p12 = pnand %p4889_p11, %p5050_p5 }
  0x23   : > { %4402 = vmatprep.subr.msk.mxu0 %vm349_vm0, %v5099_v9  ;;  %4226 = vmatprep.subr.msk.mxu1 %vm349_vm0, %v5104_v10  ;;  %6177 = vst [vmem:[#allocation10_spill] sm:$0xff] %v5160_v18  ;;  %6178 = vst [vmem:[#allocation11_spill] sm:$0xff] %v5171_v19  ;;  %v5174_v20 = vld [vmem:[%s5083_s13 + $0x71] sm:$0xff]  ;;  %v5185_v21 = vld [vmem:[%s5083_s13 + $0x79] sm:$0xff]  ;;  %p4897_p2 = por %p4896_p1, %p4895_p0 }
  0x24   : > { %4144 = vmatmul.mubr.msk.f32.gmra.mrb[2].mxu1 %vm264_vm1, %v1551_v7  ;;  %4320 = vmatmul.mubr.msk.f32.gmra.mrb[2].mxu0 %vm264_vm1, %v5109_v11  ;;  %6179 = vst [vmem:[#allocation12_spill] sm:$0xff] %v5174_v20  ;;  %6180 = vst [vmem:[#allocation13_spill] sm:$0xff] %v5185_v21  ;;  %v5188_v22 = vld [vmem:[%s5083_s13 + $0x81] sm:$0xff]  ;;  %v5199_v23 = vld [vmem:[%s5083_s13 + $0x89] sm:$0xff]  ;;  %p4891_p13 = pneg %p4890_p12 }
  0x25   : > { %4146 = vmatprep.mubr.msk.f32.mxu1 %vm264_vm1, %v5092_v8  ;;  %4322 = vmatprep.mubr.msk.f32.mxu0 %vm264_vm1, %v5114_v12  ;;  %6181 = vst [vmem:[#allocation14_spill] sm:$0xff] %v5188_v22  ;;  %6182 = vst [vmem:[#allocation15_spill] sm:$0xff] %v5199_v23  ;;  %v5202_v24 = vld [vmem:[%s5083_s13 + $0x91] sm:$0xff]  ;;  %v5213_v25 = vld [vmem:[%s5083_s13 + $0x99] sm:$0xff] }
  0x26   : > { %6183 = vst [vmem:[#allocation16_spill] sm:$0xff] %v5202_v24  ;;  %6184 = vst [vmem:[#allocation17_spill] sm:$0xff] %v5213_v25  ;;  %v5216_v26 = vld [vmem:[%s5083_s13 + $0xa1] sm:$0xff]  ;;  %v5227_v27 = vld [vmem:[%s5083_s13 + $0xa9] sm:$0xff]  ;;  %p4898_p3 = pnand %p4897_p2, %p4891_p13 }
  0x27   : > { %6185 = vst [vmem:[#allocation18_spill] sm:$0xff] %v5216_v26  ;;  %6186 = vst [vmem:[#allocation19_spill] sm:$0xff] %v5227_v27  ;;  %v5230_v28 = vld [vmem:[%s5083_s13 + $0xb1] sm:$0xff]  ;;  %v5241_v29 = vld [vmem:[%s5083_s13 + $0xb9] sm:$0xff] }
  0x28   : > { %4147 = vmatmul.mubr.msk.f32.gmra.mrb[4].mxu1 %vm264_vm1, %v5109_v11  ;;  %4323 = vmatmul.mubr.msk.f32.gmra.mrb[4].mxu0 %vm264_vm1, %v5129_v13  ;;  %6187 = vst [vmem:[#allocation20_spill] sm:$0xff] %v5230_v28  ;;  %6188 = vst [vmem:[#allocation21_spill] sm:$0xff] %v5241_v29  ;;  %v5244_v30 = vld [vmem:[%s5083_s13 + $0xc1] sm:$0xff]  ;;  %v5255_v31 = vld [vmem:[%s5083_s13 + $0xc9] sm:$0xff] }
  0x29   : > { %4149 = vmatprep.mubr.msk.f32.mxu1 %vm264_vm1, %v5114_v12  ;;  %4325 = vmatprep.mubr.msk.f32.mxu0 %vm264_vm1, %v5132_v14  ;;  %6189 = vst [vmem:[#allocation22_spill] sm:$0xff] %v5244_v30  ;;  %6190 = vst [vmem:[#allocation23_spill] sm:$0xff] %v5255_v31  ;;  %v5258_v32 = vld [vmem:[%s5083_s13 + $0xd1] sm:$0xff]  ;;  %v5269_v33 = vld [vmem:[%s5083_s13 + $0xd9] sm:$0xff] }
  0x2a   : > { %6191 = vst [vmem:[#allocation24_spill] sm:$0xff] %v5258_v32  ;;  %6192 = vst [vmem:[#allocation25_spill] sm:$0xff] %v5269_v33  ;;  %v5272_v34 = vld [vmem:[%s5083_s13 + $0xe1] sm:$0xff]  ;;  %v5283_v35 = vld [vmem:[%s5083_s13 + $0xe9] sm:$0xff] }
  0x2b   : > { %6193 = vst [vmem:[#allocation26_spill] sm:$0xff] %v5272_v34  ;;  %6194 = vst [vmem:[#allocation27_spill] sm:$0xff] %v5283_v35  ;;  %v205_v36 = vld [vmem:[%s5083_s13] sm:$0xff]  ;;  %v5287_v37 = vld [vmem:[%s5083_s13 + $0x12] sm:$0xff] }
  0x2c   : > { %4150 = vmatmul.mubr.msk.f32.gmra.mrb[6].mxu1 %vm264_vm1, %v5129_v13  ;;  %4326 = vmatmul.mubr.msk.f32.gmra.mrb[6].mxu0 %vm264_vm1, %v5143_v15  ;;  %v206_v38 = vld [vmem:[%s5083_s13 + $0x8] sm:$0xff]  ;;  %v5298_v39 = vld [vmem:[%s5083_s13 + $0x1a] sm:$0xff]  ;;  %v5301_v40 = vld [vmem:[%s5083_s13 + $0x10] sm:$0xff] }
  0x2d   : > { %4152 = vmatprep.mubr.msk.f32.mxu1 %vm264_vm1, %v5132_v14  ;;  %4328 = vmatprep.mubr.msk.f32.mxu0 %vm264_vm1, %v5146_v16  ;;  %v5304_v41 = vld [vmem:[%s5083_s13 + $0x22] sm:$0xff]  ;;  %v5324_v44 = vld [vmem:[%s5083_s13 + $0x18] sm:$0xff]  ;;  %v5327_v45 = vld [vmem:[%s5083_s13 + $0x2a] sm:$0xff] }
  0x2e   : > { %v5332_v46 = vld [vmem:[%s5083_s13 + $0x20] sm:$0xff]  ;;  %v5335_v47 = vld [vmem:[%s5083_s13 + $0x32] sm:$0xff]  ;;  %v5352_v48 = vld [vmem:[%s5083_s13 + $0x28] sm:$0xff] }
  0x2f   : > { %v5355_v49 = vld [vmem:[%s5083_s13 + $0x3a] sm:$0xff]  ;;  %v5358_v50 = vld [vmem:[%s5083_s13 + $0x30] sm:$0xff]  ;;  %v5361_v51 = vld [vmem:[%s5083_s13 + $0x42] sm:$0xff] }
  0x30   : > { %4153 = vmatmul.mubr.msk.f32.gmra.mrb[8].mxu1 %vm264_vm1, %v5143_v15  ;;  %4329 = vmatmul.mubr.msk.f32.gmra.mrb[8].mxu0 %vm264_vm1, %v5157_v17  ;;  %v5372_v52 = vld [vmem:[%s5083_s13 + $0x38] sm:$0xff]  ;;  %v5375_v53 = vld [vmem:[%s5083_s13 + $0x4a] sm:$0xff]  ;;  %v5378_v54 = vld [vmem:[%s5083_s13 + $0x40] sm:$0xff] }
  0x31   : > { %4155 = vmatprep.mubr.msk.f32.mxu1 %vm264_vm1, %v5146_v16  ;;  %4331 = vmatprep.mubr.msk.f32.mxu0 %vm264_vm1, %v5160_v18  ;;  %v5381_v55 = vld [vmem:[%s5083_s13 + $0x52] sm:$0xff]  ;;  %v5392_v56 = vld [vmem:[%s5083_s13 + $0x48] sm:$0xff]  ;;  %v5395_v57 = vld [vmem:[%s5083_s13 + $0x5a] sm:$0xff] }
  0x32   : > { %v5398_v58 = vld [vmem:[%s5083_s13 + $0x50] sm:$0xff]  ;;  %v5401_v59 = vld [vmem:[%s5083_s13 + $0x62] sm:$0xff]  ;;  %v5412_v60 = vld [vmem:[%s5083_s13 + $0x58] sm:$0xff] }
  0x33   : > { %v5415_v61 = vld [vmem:[%s5083_s13 + $0x6a] sm:$0xff]  ;;  %v5418_v62 = vld [vmem:[%s5083_s13 + $0x60] sm:$0xff]  ;;  %v5421_v63 = vld [vmem:[%s5083_s13 + $0x72] sm:$0xff] }
  0x34   : > { %4156 = vmatmul.mubr.msk.f32.gmra.mrb[10].mxu1 %vm264_vm1, %v5157_v17  ;;  %4332 = vmatmul.mubr.msk.f32.gmra.mrb[10].mxu0 %vm264_vm1, %v5171_v19  ;;  %v5432_v0 = vld [vmem:[%s5083_s13 + $0x68] sm:$0xff]  ;;  %v5435_v1 = vld [vmem:[%s5083_s13 + $0x7a] sm:$0xff]  ;;  %v5438_v2 = vld [vmem:[%s5083_s13 + $0x70] sm:$0xff] }
  0x35   : > { %4158 = vmatprep.mubr.msk.f32.mxu1 %vm264_vm1, %v5160_v18  ;;  %4334 = vmatprep.mubr.msk.f32.mxu0 %vm264_vm1, %v5174_v20  ;;  %v5441_v3 = vld [vmem:[%s5083_s13 + $0x82] sm:$0xff]  ;;  %v5452_v4 = vld [vmem:[%s5083_s13 + $0x78] sm:$0xff]  ;;  %v5455_v5 = vld [vmem:[%s5083_s13 + $0x8a] sm:$0xff] }
  0x36   : > { %v5458_v6 = vld [vmem:[%s5083_s13 + $0x80] sm:$0xff]  ;;  %v5461_v7 = vld [vmem:[%s5083_s13 + $0x92] sm:$0xff]  ;;  %v5575_v18 = vld [vmem:[%s5083_s13 + $0xea] sm:$0xff] }
  0x37   : > { %v850_v17 = vld [vmem:[%s5083_s13 + $0x2] sm:$0xff]  ;;  %v851_v16 = vld [vmem:[%s5083_s13 + $0xa] sm:$0xff] }
  0x38   : > { %4159 = vmatmul.mubr.msk.f32.gmra.mrb[12].mxu1 %vm264_vm1, %v5171_v19  ;;  %4335 = vmatmul.mubr.msk.f32.gmra.mrb[12].mxu0 %vm264_vm1, %v5185_v21  ;;  %v5572_v19 = vld [vmem:[%s5083_s13 + $0xd8] sm:$0xff] }
  0x39   : > { %4161 = vmatprep.mubr.msk.f32.mxu1 %vm264_vm1, %v5174_v20  ;;  %4337 = vmatprep.mubr.msk.f32.mxu0 %vm264_vm1, %v5188_v22  ;;  %v5561_v20 = vld [vmem:[%s5083_s13 + $0xe2] sm:$0xff] }
  0x3a   : > { %6195 = vst [vmem:[#allocation28_spill] sm:$0xff] %v5561_v20 }
  0x3c   : > { %4162 = vmatmul.mubr.msk.f32.gmra.mrb[14].mxu1 %vm264_vm1, %v5185_v21  ;;  %4338 = vmatmul.mubr.msk.f32.gmra.mrb[14].mxu0 %vm264_vm1, %v5199_v23  ;;  %v5558_v21 = vld [vmem:[%s5083_s13 + $0xd0] sm:$0xff] }
  0x3d   : > { %4164 = vmatprep.mubr.msk.f32.mxu1 %vm264_vm1, %v5188_v22  ;;  %4340 = vmatprep.mubr.msk.f32.mxu0 %vm264_vm1, %v5202_v24  ;;  %v5555_v22 = vld [vmem:[%s5083_s13 + $0xda] sm:$0xff] }
  0x40   : > { %4165 = vmatmul.mubr.msk.f32.gmra.mrb[16].mxu1 %vm264_vm1, %v5199_v23  ;;  %4341 = vmatmul.mubr.msk.f32.gmra.mrb[16].mxu0 %vm264_vm1, %v5213_v25  ;;  %v5552_v23 = vld [vmem:[%s5083_s13 + $0xc8] sm:$0xff] }
  0x41   : > { %4167 = vmatprep.mubr.msk.f32.mxu1 %vm264_vm1, %v5202_v24  ;;  %4343 = vmatprep.mubr.msk.f32.mxu0 %vm264_vm1, %v5216_v26  ;;  %v5541_v24 = vld [vmem:[%s5083_s13 + $0xd2] sm:$0xff] }
  0x44   : > { %4168 = vmatmul.mubr.msk.f32.gmra.mrb[18].mxu1 %vm264_vm1, %v5213_v25  ;;  %4344 = vmatmul.mubr.msk.f32.gmra.mrb[18].mxu0 %vm264_vm1, %v5227_v27  ;;  %v5538_v25 = vld [vmem:[%s5083_s13 + $0xc0] sm:$0xff] }
  0x45   : > { %4170 = vmatprep.mubr.msk.f32.mxu1 %vm264_vm1, %v5216_v26  ;;  %4346 = vmatprep.mubr.msk.f32.mxu0 %vm264_vm1, %v5230_v28  ;;  %v5535_v26 = vld [vmem:[%s5083_s13 + $0xca] sm:$0xff] }
  0x48   : > { %4171 = vmatmul.mubr.msk.f32.gmra.mrb[20].mxu1 %vm264_vm1, %v5227_v27  ;;  %4347 = vmatmul.mubr.msk.f32.gmra.mrb[20].mxu0 %vm264_vm1, %v5241_v29  ;;  %v5532_v27 = vld [vmem:[%s5083_s13 + $0xb8] sm:$0xff] }
  0x49   : > { %4173 = vmatprep.mubr.msk.f32.mxu1 %vm264_vm1, %v5230_v28  ;;  %4349 = vmatprep.mubr.msk.f32.mxu0 %vm264_vm1, %v5244_v30  ;;  %v5521_v28 = vld [vmem:[%s5083_s13 + $0xc2] sm:$0xff] }
  0x4c   : > { %4174 = vmatmul.mubr.msk.f32.gmra.mrb[22].mxu1 %vm264_vm1, %v5241_v29  ;;  %4350 = vmatmul.mubr.msk.f32.gmra.mrb[22].mxu0 %vm264_vm1, %v5255_v31  ;;  %v5518_v29 = vld [vmem:[%s5083_s13 + $0xb0] sm:$0xff] }
  0x4d   : > { %4176 = vmatprep.mubr.msk.f32.mxu1 %vm264_vm1, %v5244_v30  ;;  %4352 = vmatprep.mubr.msk.f32.mxu0 %vm264_vm1, %v5258_v32  ;;  %v5515_v30 = vld [vmem:[%s5083_s13 + $0xba] sm:$0xff] }
  0x50   : > { %4177 = vmatmul.mubr.msk.f32.gmra.mrb[24].mxu1 %vm264_vm1, %v5255_v31  ;;  %4353 = vmatmul.mubr.msk.f32.gmra.mrb[24].mxu0 %vm264_vm1, %v5269_v33  ;;  %v5512_v31 = vld [vmem:[%s5083_s13 + $0xa8] sm:$0xff] }
  0x51   : > { %4179 = vmatprep.mubr.msk.f32.mxu1 %vm264_vm1, %v5258_v32  ;;  %4355 = vmatprep.mubr.msk.f32.mxu0 %vm264_vm1, %v5272_v34  ;;  %v5495_v34 = vld [vmem:[%s5083_s13 + $0xaa] sm:$0xff]  ;;  %v5501_v32 = vld [vmem:[%s5083_s13 + $0xb2] sm:$0xff] }
  0x54   : > { %4180 = vmatmul.mubr.msk.f32.gmra.mrb[26].mxu1 %vm264_vm1, %v5269_v33  ;;  %4356 = vmatmul.mubr.msk.f32.gmra.mrb[26].mxu0 %vm264_vm1, %v5283_v35  ;;  %v5492_v35 = vld [vmem:[%s5083_s13 + $0x98] sm:$0xff]  ;;  %v5498_v33 = vld [vmem:[%s5083_s13 + $0xa0] sm:$0xff] }
  0x55   : > { %4184 = vmatprep.mubr.msk.f32.mxu1 %vm264_vm1, %v205_v36  ;;  %4360 = vmatprep.mubr.msk.f32.mxu0 %vm264_vm1, %v5287_v37  ;;  %v5478_v36 = vld [vmem:[%s5083_s13 + $0x90] sm:$0xff] }
  0x58   : > { %4185 = vmatmul.mubr.msk.f32.vlgmr.msra.gmra.mrb[0].mxu1 %vm264_vm1, %v206_v38  ;;  %4361 = vmatmul.mubr.msk.f32.vlgmr.msra.gmra.mrb[0].mxu0 %vm264_vm1, %v5298_v39  ;;  %v5481_v38 = vld [vmem:[%s5083_s13 + $0xa2] sm:$0xff] }
  0x59   : > { %4403 = vmatpush3.msk.msra.mxu0 %vm349_vm0, %v5099_v9  ;;  %4187 = vmatprep.mubr.msk.f32.mxu1 %vm264_vm1, %v5301_v40  ;;  %v5472_v9 = vld [vmem:[%s5083_s13 + $0x88] sm:$0xff] }
  0x5a   : > { %4363 = vmatprep.mubr.msk.f32.mxu0 %vm264_vm1, %v5304_v41  ;;  %4227 = vmatpush3.msk.msra.mxu1 %vm349_vm0, %v5104_v10  ;;  %v5475_v10 = vld [vmem:[%s5083_s13 + $0x9a] sm:$0xff] }
  0x5b   : > { %4446 = vmatprep.subr.msk.mxu0 %vm349_vm0, %v5312_v42  ;;  %4270 = vmatprep.subr.msk.mxu1 %vm349_vm0, %v5317_v43 }
  0x5c   : > { %4188 = vmatmul.mubr.msk.f32.gmra.mrb[2].mxu1 %vm264_vm1, %v5324_v44  ;;  %4364 = vmatmul.mubr.msk.f32.gmra.mrb[2].mxu0 %vm264_vm1, %v5327_v45 }
  0x5d   : > { %4190 = vmatprep.mubr.msk.f32.mxu1 %vm264_vm1, %v5332_v46  ;;  %4366 = vmatprep.mubr.msk.f32.mxu0 %vm264_vm1, %v5335_v47 }
  0x60   : > { %4191 = vmatmul.mubr.msk.f32.gmra.mrb[4].mxu1 %vm264_vm1, %v5352_v48  ;;  %4367 = vmatmul.mubr.msk.f32.gmra.mrb[4].mxu0 %vm264_vm1, %v5355_v49 }
  0x61   : > { %4193 = vmatprep.mubr.msk.f32.mxu1 %vm264_vm1, %v5358_v50  ;;  %4369 = vmatprep.mubr.msk.f32.mxu0 %vm264_vm1, %v5361_v51 }
  0x64   : > { %4194 = vmatmul.mubr.msk.f32.gmra.mrb[6].mxu1 %vm264_vm1, %v5372_v52  ;;  %4370 = vmatmul.mubr.msk.f32.gmra.mrb[6].mxu0 %vm264_vm1, %v5375_v53 }
  0x65   : > { %4196 = vmatprep.mubr.msk.f32.mxu1 %vm264_vm1, %v5378_v54  ;;  %4372 = vmatprep.mubr.msk.f32.mxu0 %vm264_vm1, %v5381_v55 }
  0x68   : > { %4197 = vmatmul.mubr.msk.f32.gmra.mrb[8].mxu1 %vm264_vm1, %v5392_v56  ;;  %4373 = vmatmul.mubr.msk.f32.gmra.mrb[8].mxu0 %vm264_vm1, %v5395_v57 }
  0x69   : > { %4199 = vmatprep.mubr.msk.f32.mxu1 %vm264_vm1, %v5398_v58  ;;  %4375 = vmatprep.mubr.msk.f32.mxu0 %vm264_vm1, %v5401_v59 }
  0x6c   : > { %4200 = vmatmul.mubr.msk.f32.gmra.mrb[10].mxu1 %vm264_vm1, %v5412_v60  ;;  %4376 = vmatmul.mubr.msk.f32.gmra.mrb[10].mxu0 %vm264_vm1, %v5415_v61 }
  0x6d   : > { %4202 = vmatprep.mubr.msk.f32.mxu1 %vm264_vm1, %v5418_v62  ;;  %4378 = vmatprep.mubr.msk.f32.mxu0 %vm264_vm1, %v5421_v63 }
  0x70   : > { %4203 = vmatmul.mubr.msk.f32.gmra.mrb[12].mxu1 %vm264_vm1, %v5432_v0  ;;  %4379 = vmatmul.mubr.msk.f32.gmra.mrb[12].mxu0 %vm264_vm1, %v5435_v1 }
  0x71   : > { %4205 = vmatprep.mubr.msk.f32.mxu1 %vm264_vm1, %v5438_v2  ;;  %4381 = vmatprep.mubr.msk.f32.mxu0 %vm264_vm1, %v5441_v3 }
  0x74   : > { %4206 = vmatmul.mubr.msk.f32.gmra.mrb[14].mxu1 %vm264_vm1, %v5452_v4  ;;  %4382 = vmatmul.mubr.msk.f32.gmra.mrb[14].mxu0 %vm264_vm1, %v5455_v5 }
  0x75   : > { %4208 = vmatprep.mubr.msk.f32.mxu1 %vm264_vm1, %v5458_v6  ;;  %4384 = vmatprep.mubr.msk.f32.mxu0 %vm264_vm1, %v5461_v7 }
  0x78   : > { %4209 = vmatmul.mubr.msk.f32.gmra.mrb[16].mxu1 %vm264_vm1, %v5472_v9  ;;  %4385 = vmatmul.mubr.msk.f32.gmra.mrb[16].mxu0 %vm264_vm1, %v5475_v10 }
  0x79   : > { %4211 = vmatprep.mubr.msk.f32.mxu1 %vm264_vm1, %v5478_v36  ;;  %4387 = vmatprep.mubr.msk.f32.mxu0 %vm264_vm1, %v5481_v38 }
  0x7c   : > { %4212 = vmatmul.mubr.msk.f32.gmra.mrb[18].mxu1 %vm264_vm1, %v5492_v35  ;;  %4388 = vmatmul.mubr.msk.f32.gmra.mrb[18].mxu0 %vm264_vm1, %v5495_v34 }
  0x7d   : > { %4214 = vmatprep.mubr.msk.f32.mxu1 %vm264_vm1, %v5498_v33  ;;  %4390 = vmatprep.mubr.msk.f32.mxu0 %vm264_vm1, %v5501_v32 }
  0x80   : > { %4215 = vmatmul.mubr.msk.f32.gmra.mrb[20].mxu1 %vm264_vm1, %v5512_v31  ;;  %4391 = vmatmul.mubr.msk.f32.gmra.mrb[20].mxu0 %vm264_vm1, %v5515_v30 }
  0x81   : > { %4217 = vmatprep.mubr.msk.f32.mxu1 %vm264_vm1, %v5518_v29  ;;  %4393 = vmatprep.mubr.msk.f32.mxu0 %vm264_vm1, %v5521_v28 }
  0x84   : > { %4218 = vmatmul.mubr.msk.f32.gmra.mrb[22].mxu1 %vm264_vm1, %v5532_v27  ;;  %4394 = vmatmul.mubr.msk.f32.gmra.mrb[22].mxu0 %vm264_vm1, %v5535_v26 }
  0x85   : > { %4220 = vmatprep.mubr.msk.f32.mxu1 %vm264_vm1, %v5538_v25  ;;  %4396 = vmatprep.mubr.msk.f32.mxu0 %vm264_vm1, %v5541_v24 }
  0x88   : > { %4221 = vmatmul.mubr.msk.f32.gmra.mrb[24].mxu1 %vm264_vm1, %v5552_v23  ;;  %4397 = vmatmul.mubr.msk.f32.gmra.mrb[24].mxu0 %vm264_vm1, %v5555_v22 }
  0x89   : > { %4223 = vmatprep.mubr.msk.f32.mxu1 %vm264_vm1, %v5558_v21  ;;  %4399 = vmatprep.mubr.msk.f32.mxu0 %vm264_vm1, %v5561_v20  ;;  %v5592_v20 = vld [vmem:[%s6148_s1 + $0x20] sm:$0xf] }
  0x8c   : > { %4224 = vmatmul.mubr.msk.f32.gmra.mrb[26].mxu1 %vm264_vm1, %v5572_v19  ;;  %4400 = vmatmul.mubr.msk.f32.gmra.mrb[26].mxu0 %vm264_vm1, %v5575_v18 }
  0x8d   : > { %4228 = vmatprep.mubr.msk.f32.mxu1 %vm264_vm1, %v850_v17  ;;  %4404 = vmatprep.mubr.msk.f32.mxu0 %vm264_vm1, %v5332_v46  ;;  %v5696_v17 = vld [vmem:[%s5083_s13 + $0xe8] sm:$0xff] }
  0x90   : > { %4229 = vmatmul.mubr.msk.f32.vlgmr.msra.gmra.mrb[0].mxu1 %vm264_vm1, %v851_v16  ;;  %4405 = vmatmul.mubr.msk.f32.vlgmr.msra.gmra.mrb[0].mxu0 %vm264_vm1, %v5352_v48  ;;  %v5685_v16 = vld [vmem:[%s5083_s13 + $0xe0] sm:$0xff] }
  0x91   : > { %4447 = vmatpush3.msk.msra.mxu0 %vm349_vm0, %v5312_v42  ;;  %4231 = vmatprep.mubr.msk.f32.mxu1 %vm264_vm1, %v5287_v37  ;;  %v2276_v37 = vld [vmem:[%s5083_s13 + $0xf0] sm:$0xff]  ;;  %v6204_v42 = vld [vmem:[#allocation16_spill] sm:$0xff] }
  0x92   : > { %4407 = vmatprep.mubr.msk.f32.mxu0 %vm264_vm1, %v5358_v50  ;;  %4271 = vmatpush3.msk.msra.mxu1 %vm349_vm0, %v5317_v43  ;;  %v6205_v43 = vld [vmem:[#allocation17_spill] sm:$0xff] }
  0x93   : > { %4490 = vmatprep.subr.msk.mxu0 %vm349_vm0, %v5592_v20 }
  0x94   : > { %4232 = vmatmul.mubr.msk.f32.gmra.mrb[2].mxu1 %vm264_vm1, %v5298_v39  ;;  %4408 = vmatmul.mubr.msk.f32.gmra.mrb[2].mxu0 %vm264_vm1, %v5372_v52  ;;  %v2277_v39 = vld [vmem:[%s5083_s13 + $0xf8] sm:$0xff] }
  0x95   : > { %4234 = vmatprep.mubr.msk.f32.mxu1 %vm264_vm1, %v5304_v41  ;;  %4410 = vmatprep.mubr.msk.f32.mxu0 %vm264_vm1, %v5378_v54 }
  0x98   : > { %4235 = vmatmul.mubr.msk.f32.gmra.mrb[4].mxu1 %vm264_vm1, %v5327_v45  ;;  %4411 = vmatmul.mubr.msk.f32.gmra.mrb[4].mxu0 %vm264_vm1, %v5392_v56 }
  0x99   : > { %4237 = vmatprep.mubr.msk.f32.mxu1 %vm264_vm1, %v5335_v47  ;;  %4413 = vmatprep.mubr.msk.f32.mxu0 %vm264_vm1, %v5398_v58 }
  0x9c   : > { %4238 = vmatmul.mubr.msk.f32.gmra.mrb[6].mxu1 %vm264_vm1, %v5355_v49  ;;  %4414 = vmatmul.mubr.msk.f32.gmra.mrb[6].mxu0 %vm264_vm1, %v5412_v60 }
  0x9d   : > { %4240 = vmatprep.mubr.msk.f32.mxu1 %vm264_vm1, %v5361_v51  ;;  %4416 = vmatprep.mubr.msk.f32.mxu0 %vm264_vm1, %v5418_v62 }
  0xa0   : > { %4241 = vmatmul.mubr.msk.f32.gmra.mrb[8].mxu1 %vm264_vm1, %v5375_v53  ;;  %4417 = vmatmul.mubr.msk.f32.gmra.mrb[8].mxu0 %vm264_vm1, %v5432_v0 }
  0xa1   : > { %4243 = vmatprep.mubr.msk.f32.mxu1 %vm264_vm1, %v5381_v55  ;;  %4419 = vmatprep.mubr.msk.f32.mxu0 %vm264_vm1, %v5438_v2 }
  0xa4   : > { %4244 = vmatmul.mubr.msk.f32.gmra.mrb[10].mxu1 %vm264_vm1, %v5395_v57  ;;  %4420 = vmatmul.mubr.msk.f32.gmra.mrb[10].mxu0 %vm264_vm1, %v5452_v4 }
  0xa5   : > { %4246 = vmatprep.mubr.msk.f32.mxu1 %vm264_vm1, %v5401_v59  ;;  %4422 = vmatprep.mubr.msk.f32.mxu0 %vm264_vm1, %v5458_v6 }
  0xa8   : > { %4247 = vmatmul.mubr.msk.f32.gmra.mrb[12].mxu1 %vm264_vm1, %v5415_v61  ;;  %4423 = vmatmul.mubr.msk.f32.gmra.mrb[12].mxu0 %vm264_vm1, %v5472_v9 }
  0xa9   : > { %4249 = vmatprep.mubr.msk.f32.mxu1 %vm264_vm1, %v5421_v63  ;;  %4425 = vmatprep.mubr.msk.f32.mxu0 %vm264_vm1, %v5478_v36 }
  0xac   : > { %4250 = vmatmul.mubr.msk.f32.gmra.mrb[14].mxu1 %vm264_vm1, %v5435_v1  ;;  %4426 = vmatmul.mubr.msk.f32.gmra.mrb[14].mxu0 %vm264_vm1, %v5492_v35 }
  0xad   : > { %4252 = vmatprep.mubr.msk.f32.mxu1 %vm264_vm1, %v5441_v3  ;;  %4428 = vmatprep.mubr.msk.f32.mxu0 %vm264_vm1, %v5498_v33 }
  0xb0   : > { %4253 = vmatmul.mubr.msk.f32.gmra.mrb[16].mxu1 %vm264_vm1, %v5455_v5  ;;  %4429 = vmatmul.mubr.msk.f32.gmra.mrb[16].mxu0 %vm264_vm1, %v5512_v31 }
  0xb1   : > { %4255 = vmatprep.mubr.msk.f32.mxu1 %vm264_vm1, %v5461_v7  ;;  %4431 = vmatprep.mubr.msk.f32.mxu0 %vm264_vm1, %v5518_v29 }
  0xb4   : > { %4256 = vmatmul.mubr.msk.f32.gmra.mrb[18].mxu1 %vm264_vm1, %v5475_v10  ;;  %4432 = vmatmul.mubr.msk.f32.gmra.mrb[18].mxu0 %vm264_vm1, %v5532_v27 }
  0xb5   : > { %4258 = vmatprep.mubr.msk.f32.mxu1 %vm264_vm1, %v5481_v38  ;;  %4434 = vmatprep.mubr.msk.f32.mxu0 %vm264_vm1, %v5538_v25 }
  0xb8   : > { %4259 = vmatmul.mubr.msk.f32.gmra.mrb[20].mxu1 %vm264_vm1, %v5495_v34  ;;  %4435 = vmatmul.mubr.msk.f32.gmra.mrb[20].mxu0 %vm264_vm1, %v5552_v23 }
  0xb9   : > { %4261 = vmatprep.mubr.msk.f32.mxu1 %vm264_vm1, %v5501_v32  ;;  %4437 = vmatprep.mubr.msk.f32.mxu0 %vm264_vm1, %v5558_v21 }
  0xbc   : > { %4262 = vmatmul.mubr.msk.f32.gmra.mrb[22].mxu1 %vm264_vm1, %v5515_v30  ;;  %4438 = vmatmul.mubr.msk.f32.gmra.mrb[22].mxu0 %vm264_vm1, %v5572_v19 }
  0xbd   : > { %4264 = vmatprep.mubr.msk.f32.mxu1 %vm264_vm1, %v5521_v28  ;;  %4440 = vmatprep.mubr.msk.f32.mxu0 %vm264_vm1, %v5685_v16 }
  0xc0   : > { %4265 = vmatmul.mubr.msk.f32.gmra.mrb[24].mxu1 %vm264_vm1, %v5535_v26  ;;  %4441 = vmatmul.mubr.msk.f32.gmra.mrb[24].mxu0 %vm264_vm1, %v5696_v17 }
  0xc1   : > { %4267 = vmatprep.mubr.msk.f32.mxu1 %vm264_vm1, %v5541_v24  ;;  %4443 = vmatprep.mubr.msk.f32.mxu0 %vm264_vm1, %v2276_v37 }
  0xc4   : > { %4268 = vmatmul.mubr.msk.f32.gmra.mrb[26].mxu1 %vm264_vm1, %v5555_v22  ;;  %4444 = vmatmul.mubr.msk.f32.gmra.mrb[26].mxu0 %vm264_vm1, %v2277_v39 }
  0xc5   : > { %4272 = vmatprep.mubr.msk.f32.mxu1 %vm264_vm1, %v5301_v40  ;;  %4448 = vmatprep.mubr.msk.f32.mxu0 %vm264_vm1, %v5092_v8  ;;  %v6196_v8 = vld [vmem:[#allocation8_spill] sm:$0xff]  ;;  %v6203_v40 = vld [vmem:[#allocation15_spill] sm:$0xff] }
  0xc8   : > { %4273 = vmatmul.mubr.msk.f32.vlgmr.msra.gmra.mrb[0].mxu1 %vm264_vm1, %v5324_v44  ;;  %4449 = vmatmul.mubr.msk.f32.vlgmr.msra.gmra.mrb[0].mxu0 %vm264_vm1, %v5109_v11  ;;  %v6197_v11 = vld [vmem:[#allocation9_spill] sm:$0xff]  ;;  %v6206_v44 = vld [vmem:[#allocation18_spill] sm:$0xff] }
  0xc9   : > { %4491 = vmatpush3.msk.msra.mxu0 %vm349_vm0, %v5592_v20  ;;  %4275 = vmatprep.mubr.msk.f32.mxu1 %vm264_vm1, %v5332_v46  ;;  %v6202_v20 = vld [vmem:[#allocation14_spill] sm:$0xff]  ;;  %v6207_v46 = vld [vmem:[#allocation19_spill] sm:$0xff] }
  0xca   : > { %4451 = vmatprep.mubr.msk.f32.mxu0 %vm264_vm1, %v5114_v12  ;;  %v6198_v12 = vld [vmem:[#allocation10_spill] sm:$0xff] }
  0xcc   : > { %4276 = vmatmul.mubr.msk.f32.gmra.mrb[2].mxu1 %vm264_vm1, %v5352_v48  ;;  %4452 = vmatmul.mubr.msk.f32.gmra.mrb[2].mxu0 %vm264_vm1, %v5129_v13  ;;  %v6199_v13 = vld [vmem:[#allocation11_spill] sm:$0xff]  ;;  %v6208_v48 = vld [vmem:[#allocation20_spill] sm:$0xff] }
  0xcd   : > { %4278 = vmatprep.mubr.msk.f32.mxu1 %vm264_vm1, %v5358_v50  ;;  %4454 = vmatprep.mubr.msk.f32.mxu0 %vm264_vm1, %v5132_v14  ;;  %v6200_v14 = vld [vmem:[#allocation12_spill] sm:$0xff]  ;;  %v6209_v50 = vld [vmem:[#allocation21_spill] sm:$0xff] }
  0xd0   : > { %4279 = vmatmul.mubr.msk.f32.gmra.mrb[4].mxu1 %vm264_vm1, %v5372_v52  ;;  %4455 = vmatmul.mubr.msk.f32.gmra.mrb[4].mxu0 %vm264_vm1, %v5143_v15  ;;  %v6201_v15 = vld [vmem:[#allocation13_spill] sm:$0xff] }
  0xd1   : > { %4281 = vmatprep.mubr.msk.f32.mxu1 %vm264_vm1, %v5378_v54  ;;  %4457 = vmatprep.mubr.msk.f32.mxu0 %vm264_vm1, %v6196_v8  ;;  %v6213_v52 = vld [vmem:[#allocation25_spill] sm:$0xff] }
  0xd4   : > { %4282 = vmatmul.mubr.msk.f32.gmra.mrb[6].mxu1 %vm264_vm1, %v5392_v56  ;;  %4458 = vmatmul.mubr.msk.f32.gmra.mrb[6].mxu0 %vm264_vm1, %v6197_v11 }
  0xd5   : > { %4284 = vmatprep.mubr.msk.f32.mxu1 %vm264_vm1, %v5398_v58  ;;  %4460 = vmatprep.mubr.msk.f32.mxu0 %vm264_vm1, %v6198_v12 }
  0xd8   : > { %4285 = vmatmul.mubr.msk.f32.gmra.mrb[8].mxu1 %vm264_vm1, %v5412_v60  ;;  %4461 = vmatmul.mubr.msk.f32.gmra.mrb[8].mxu0 %vm264_vm1, %v6199_v13 }
  0xd9   : > { %4287 = vmatprep.mubr.msk.f32.mxu1 %vm264_vm1, %v5418_v62  ;;  %4463 = vmatprep.mubr.msk.f32.mxu0 %vm264_vm1, %v6200_v14 }
  0xdc   : > { %4288 = vmatmul.mubr.msk.f32.gmra.mrb[10].mxu1 %vm264_vm1, %v5432_v0  ;;  %4464 = vmatmul.mubr.msk.f32.gmra.mrb[10].mxu0 %vm264_vm1, %v6201_v15 }
  0xdd   : > { %4290 = vmatprep.mubr.msk.f32.mxu1 %vm264_vm1, %v5438_v2  ;;  %4466 = vmatprep.mubr.msk.f32.mxu0 %vm264_vm1, %v6202_v20 }
  0xe0   : > { %4291 = vmatmul.mubr.msk.f32.gmra.mrb[12].mxu1 %vm264_vm1, %v5452_v4  ;;  %4467 = vmatmul.mubr.msk.f32.gmra.mrb[12].mxu0 %vm264_vm1, %v6203_v40 }
  0xe1   : > { %4293 = vmatprep.mubr.msk.f32.mxu1 %vm264_vm1, %v5458_v6  ;;  %4469 = vmatprep.mubr.msk.f32.mxu0 %vm264_vm1, %v6204_v42 }
  0xe4   : > { %4294 = vmatmul.mubr.msk.f32.gmra.mrb[14].mxu1 %vm264_vm1, %v5472_v9  ;;  %4470 = vmatmul.mubr.msk.f32.gmra.mrb[14].mxu0 %vm264_vm1, %v6205_v43 }
  0xe5   : > { %4296 = vmatprep.mubr.msk.f32.mxu1 %vm264_vm1, %v5478_v36  ;;  %4472 = vmatprep.mubr.msk.f32.mxu0 %vm264_vm1, %v6206_v44 }
  0xe8   : > { %4297 = vmatmul.mubr.msk.f32.gmra.mrb[16].mxu1 %vm264_vm1, %v5492_v35  ;;  %4473 = vmatmul.mubr.msk.f32.gmra.mrb[16].mxu0 %vm264_vm1, %v6207_v46  ;;  %v6210_v35 = vld [vmem:[#allocation22_spill] sm:$0xff] }
  0xe9   : > { %4299 = vmatprep.mubr.msk.f32.mxu1 %vm264_vm1, %v5498_v33  ;;  %4475 = vmatprep.mubr.msk.f32.mxu0 %vm264_vm1, %v6208_v48  ;;  %v6211_v33 = vld [vmem:[#allocation23_spill] sm:$0xff] }
  0xec   : > { %4300 = vmatmul.mubr.msk.f32.gmra.mrb[18].mxu1 %vm264_vm1, %v5512_v31  ;;  %4476 = vmatmul.mubr.msk.f32.gmra.mrb[18].mxu0 %vm264_vm1, %v6209_v50  ;;  %v6212_v31 = vld [vmem:[#allocation24_spill] sm:$0xff] }
  0xed   : > { %4302 = vmatprep.mubr.msk.f32.mxu1 %vm264_vm1, %v5518_v29  ;;  %4478 = vmatprep.mubr.msk.f32.mxu0 %vm264_vm1, %v6210_v35  ;;  %v6214_v29 = vld [vmem:[#allocation26_spill] sm:$0xff] }
  0xf0   : > { %4303 = vmatmul.mubr.msk.f32.gmra.mrb[20].mxu1 %vm264_vm1, %v5532_v27  ;;  %4479 = vmatmul.mubr.msk.f32.gmra.mrb[20].mxu0 %vm264_vm1, %v6211_v33  ;;  %v2626_v27 = vld [vmem:[%s5083_s13 + $0xf1] sm:$0xff] }
  0xf1   : > { %4305 = vmatprep.mubr.msk.f32.mxu1 %vm264_vm1, %v5538_v25  ;;  %4481 = vmatprep.mubr.msk.f32.mxu0 %vm264_vm1, %v6212_v31  ;;  %v6215_v25 = vld [vmem:[#allocation27_spill] sm:$0xff] }
  0xf4   : > { %4306 = vmatmul.mubr.msk.f32.gmra.mrb[22].mxu1 %vm264_vm1, %v5552_v23  ;;  %4482 = vmatmul.mubr.msk.f32.gmra.mrb[22].mxu0 %vm264_vm1, %v6213_v52  ;;  %v2627_v23 = vld [vmem:[%s5083_s13 + $0xf9] sm:$0xff] }
  0xf5   : > { %4308 = vmatprep.mubr.msk.f32.mxu1 %vm264_vm1, %v5558_v21  ;;  %4484 = vmatprep.mubr.msk.f32.mxu0 %vm264_vm1, %v6214_v29  ;;  %v2976_v21 = vld [vmem:[%s5083_s13 + $0xf2] sm:$0xff] }
  0xf8   : > { %4309 = vmatmul.mubr.msk.f32.gmra.mrb[24].mxu1 %vm264_vm1, %v5572_v19  ;;  %4485 = vmatmul.mubr.msk.f32.gmra.mrb[24].mxu0 %vm264_vm1, %v6215_v25  ;;  %v6216_v19 = vld [vmem:[#allocation28_spill] sm:$0xff] }
  0xf9   : > { %4311 = vmatprep.mubr.msk.f32.mxu1 %vm264_vm1, %v5685_v16  ;;  %4487 = vmatprep.mubr.msk.f32.mxu0 %vm264_vm1, %v2626_v27 }
  0xfc   : > { %4312 = vmatmul.mubr.msk.f32.gmra.mrb[26].mxu1 %vm264_vm1, %v5696_v17  ;;  %4488 = vmatmul.mubr.msk.f32.gmra.mrb[26].mxu0 %vm264_vm1, %v2627_v23 }
  0xfd   : > { %4492 = vmatprep.mubr.msk.f32.mxu0 %vm264_vm1, %v5304_v41 }
 0x100   : > { %4493 = vmatmul.mubr.msk.f32.vlgmr.msra.gmra.mrb[0].mxu0 %vm264_vm1, %v5327_v45 }
 0x101   : > { %4495 = vmatprep.mubr.msk.f32.mxu0 %vm264_vm1, %v5335_v47 }
 0x104   : > { %4496 = vmatmul.mubr.msk.f32.gmra.mrb[2].mxu0 %vm264_vm1, %v5355_v49 }
 0x105   : > { %4498 = vmatprep.mubr.msk.f32.mxu0 %vm264_vm1, %v5361_v51 }
 0x108   : > { %4499 = vmatmul.mubr.msk.f32.gmra.mrb[4].mxu0 %vm264_vm1, %v5375_v53 }
 0x109   : > { %4501 = vmatprep.mubr.msk.f32.mxu0 %vm264_vm1, %v5381_v55 }
 0x10c   : > { %4502 = vmatmul.mubr.msk.f32.gmra.mrb[6].mxu0 %vm264_vm1, %v5395_v57 }
 0x10d   : > { %4504 = vmatprep.mubr.msk.f32.mxu0 %vm264_vm1, %v5401_v59 }
 0x110   : > { %4505 = vmatmul.mubr.msk.f32.gmra.mrb[8].mxu0 %vm264_vm1, %v5415_v61 }
 0x111   : > { %4507 = vmatprep.mubr.msk.f32.mxu0 %vm264_vm1, %v5421_v63 }
 0x114   : > { %4508 = vmatmul.mubr.msk.f32.gmra.mrb[10].mxu0 %vm264_vm1, %v5435_v1 }
 0x115   : > { %4510 = vmatprep.mubr.msk.f32.mxu0 %vm264_vm1, %v5441_v3 }
 0x118   : > { %4511 = vmatmul.mubr.msk.f32.gmra.mrb[12].mxu0 %vm264_vm1, %v5455_v5 }
 0x119   : > { %4513 = vmatprep.mubr.msk.f32.mxu0 %vm264_vm1, %v5461_v7 }
 0x11c   : > { %4514 = vmatmul.mubr.msk.f32.gmra.mrb[14].mxu0 %vm264_vm1, %v5475_v10 }
 0x11d   : > { %4516 = vmatprep.mubr.msk.f32.mxu0 %vm264_vm1, %v5481_v38 }
 0x120   : > { %4517 = vmatmul.mubr.msk.f32.gmra.mrb[16].mxu0 %vm264_vm1, %v5495_v34 }
 0x121   : > { %4519 = vmatprep.mubr.msk.f32.mxu0 %vm264_vm1, %v5501_v32 }
 0x124   : > { %4520 = vmatmul.mubr.msk.f32.gmra.mrb[18].mxu0 %vm264_vm1, %v5515_v30  ;;  %v2977_v30 = vld [vmem:[%s5083_s13 + $0xfa] sm:$0xff] }
 0x125   : > { %4522 = vmatprep.mubr.msk.f32.mxu0 %vm264_vm1, %v5521_v28  ;;  %v4984_v28 = vmov 0.0|0.0  }
 0x126   : > { %4534 = vmatprep.subr.bf16.mxu1 %v4984_v28 }
 0x128   : > { %4523 = vmatmul.mubr.msk.f32.gmra.mrb[20].mxu0 %vm264_vm1, %v5535_v26  ;;  %v3302_v26 = vlaneseq }
 0x129   : > { %4525 = vmatprep.mubr.msk.f32.mxu0 %vm264_vm1, %v5541_v24 }
 0x12a   : > { %v3303_v24 = vshrl.u32 %v3302_v26, 7 }
 0x12c   : > { %4526 = vmatmul.mubr.msk.f32.gmra.mrb[22].mxu0 %vm264_vm1, %v5555_v22  ;;  %v3308_v32 = vsub.s32 1, %v3303_v24  ;;  %v3300_v22 = vld [vmem:[%s6149_s2] sm:$0x3]  ;;  %v3304_v34 = vsub.s32 0, %v3303_v24 }
 0x12d   : > { %4528 = vmatprep.mubr.msk.f32.mxu0 %vm264_vm1, %v6216_v19 }
 0x12e   : > { %v5884_v41 = vrot.slane %v3300_v22, %v3308_v32 }
 0x130   : > { %4529 = vmatmul.mubr.msk.f32.gmra.mrb[24].mxu0 %vm264_vm1, %v5575_v18  ;;  %v5886_v18 = vrot.slane %v3300_v22, %v3304_v34  ;;  %3871 = vmatprep.mubr.msk.f32.mxu1 %vm3311_vm2, %v5884_v41 }
 0x131   : > { %4531 = vmatprep.mubr.msk.f32.mxu0 %vm264_vm1, %v2976_v21 }
 0x134   : > { %4532 = vmatmul.mubr.msk.f32.gmra.mrb[26].mxu0 %vm264_vm1, %v2977_v30 }
 0x19b   : > { %v4274_v45 = vpop.f32.mrb[0].mxu1 }
 0x19c   : > { %v1383_v47 = vpop.f32.mrb[1].mxu1 }
 0x19f   : > { %v4277_v49 = vpop.f32.mrb[2].mxu1 }
 0x1a0   : > { %v1393_v51 = vpop.f32.mrb[3].mxu1 }
 0x1a3   : > { %v4280_v53 = vpop.f32.mrb[4].mxu1 }
 0x1a4   : > { %v1403_v54 = vpop.f32.mrb[5].mxu1 }
 0x1a7   : > { %v4283_v55 = vpop.f32.mrb[6].mxu1 }
 0x1a8   : > { %v1413_v56 = vpop.f32.mrb[7].mxu1 }
 0x1ab   : > { %v4286_v57 = vpop.f32.mrb[8].mxu1 }
 0x1ac   : > { %v1423_v58 = vpop.f32.mrb[9].mxu1 }
 0x1af   : > { %v5890_v59 = vpop.f32.mrb[10].mxu1 }
 0x1b0   : > { %v5892_v60 = vpop.f32.mrb[11].mxu1 }
 0x1b3   : > { %v5894_v61 = vpop.f32.mrb[12].mxu1 }
 0x1b4   : > { %v5896_v62 = vpop.f32.mrb[13].mxu1 }
 0x1b7   : > { %v5898_v63 = vpop.f32.mrb[14].mxu1 }
 0x1b8   : > { %v5900_v0 = vpop.f32.mrb[15].mxu1 }
 0x1bb   : > { %v5902_v1 = vpop.f32.mrb[16].mxu1 }
 0x1bc   : > { %v5904_v2 = vpop.f32.mrb[17].mxu1 }
 0x1bf   : > { %v5906_v3 = vpop.f32.mrb[18].mxu1 }
 0x1c0   : > { %v5908_v4 = vpop.f32.mrb[19].mxu1 }
 0x1c3   : > { %v5910_v5 = vpop.f32.mrb[20].mxu1 }
 0x1c4   : > { %v5912_v6 = vpop.f32.mrb[21].mxu1 }
 0x1c7   : > { %v5914_v7 = vpop.f32.mrb[22].mxu1 }
 0x1c8   : > { %v5916_v9 = vpop.f32.mrb[23].mxu1 }
 0x1cb   : > { %v5918_v10 = vpop.f32.mrb[24].mxu1 }
 0x1cc   : > { %v5920_v36 = vpop.f32.mrb[25].mxu1 }
 0x1cf   : > { %v5922_v38 = vpop.f32.mrb[26].mxu1 }
 0x1d0   : > { %v5924_v16 = vpop.f32.mrb[27].mxu1 }
 0x1d3   : > { %v4494_v17 = vpop.f32.mrb[0].mxu0 }
 0x1d4   : > { %v4618_v37 = vadd.f32 %v4494_v17, %v4274_v45  ;;  %v3133_v39 = vpop.f32.mrb[1].mxu0 }
 0x1d5   : > { %v4619_v8 = vadd.f32 %v3133_v39, %v1383_v47 }
 0x1d6   : > { %v5926_v11 = vmul.f32 %v4618_v37, %v4618_v37 }
 0x1d7   : > { %v4535_v12 = vpack.c.bf16 %v4618_v37, %v4619_v8  ;;  %v5928_v13 = vmul.f32 %v4619_v8, %v4619_v8  ;;  %v4497_v14 = vpop.f32.mrb[2].mxu0 }
 0x1d8   : > { %v4620_v15 = vadd.f32 %v4497_v14, %v4277_v49  ;;  %v3143_v20 = vpop.f32.mrb[3].mxu0 }
 0x1d9   : > { %v4577_v40 = vpack.c.bf16 %v5926_v11, %v5928_v13  ;;  %v4621_v42 = vadd.f32 %v3143_v20, %v1393_v51  ;;  %4536 = vmatpush1.bf16.msra.mxu1 %v4535_v12 }
 0x1da   : > { %v5932_v43 = vmul.f32 %v4620_v15, %v4620_v15  ;;  %4537 = vmatprep.subr.bf16.mxu1 %v4984_v28 }
 0x1db   : > { %v4538_v44 = vpack.c.bf16 %v4620_v15, %v4621_v42  ;;  %v5935_v46 = vmul.f32 %v4621_v42, %v4621_v42  ;;  %v4500_v48 = vpop.f32.mrb[4].mxu0 }
 0x1dc   : > { %v4622_v50 = vadd.f32 %v4500_v48, %v4280_v53  ;;  %v3153_v35 = vpop.f32.mrb[5].mxu0 }
 0x1dd   : > { %v4580_v33 = vpack.c.bf16 %v5932_v43, %v5935_v46  ;;  %v4623_v31 = vadd.f32 %v3153_v35, %v1403_v54  ;;  %4539 = vmatpush1.bf16.msra.mxu1 %v4538_v44 }
 0x1de   : > { %v5939_v52 = vmul.f32 %v4622_v50, %v4622_v50  ;;  %4540 = vmatprep.subr.bf16.mxu1 %v4984_v28 }
 0x1df   : > { %v4541_v29 = vpack.c.bf16 %v4622_v50, %v4623_v31  ;;  %v5942_v27 = vmul.f32 %v4623_v31, %v4623_v31  ;;  %v4503_v25 = vpop.f32.mrb[6].mxu0 }
 0x1e0   : > { %v4624_v23 = vadd.f32 %v4503_v25, %v4283_v55  ;;  %v3163_v19 = vpop.f32.mrb[7].mxu0 }
 0x1e1   : > { %v4583_v21 = vpack.c.bf16 %v5939_v52, %v5942_v27  ;;  %v4625_v30 = vadd.f32 %v3163_v19, %v1413_v56  ;;  %4542 = vmatpush1.bf16.msra.mxu1 %v4541_v29 }
 0x1e2   : > { %v5946_v26 = vmul.f32 %v4624_v23, %v4624_v23  ;;  %4543 = vmatprep.subr.bf16.mxu1 %v4984_v28 }
 0x1e3   : > { %v4544_v24 = vpack.c.bf16 %v4624_v23, %v4625_v30  ;;  %v5949_v32 = vmul.f32 %v4625_v30, %v4625_v30  ;;  %v4506_v22 = vpop.f32.mrb[8].mxu0 }
 0x1e4   : > { %v4626_v34 = vadd.f32 %v4506_v22, %v4286_v57  ;;  %v3173_v45 = vpop.f32.mrb[9].mxu0 }
 0x1e5   : > { %v4586_v47 = vpack.c.bf16 %v5946_v26, %v5949_v32  ;;  %v4627_v49 = vadd.f32 %v3173_v45, %v1423_v58  ;;  %4545 = vmatpush1.bf16.msra.mxu1 %v4544_v24 }
 0x1e6   : > { %v5953_v51 = vmul.f32 %v4626_v34, %v4626_v34  ;;  %4546 = vmatprep.subr.bf16.mxu1 %v4984_v28 }
 0x1e7   : > { %v4547_v53 = vpack.c.bf16 %v4626_v34, %v4627_v49  ;;  %v5956_v54 = vmul.f32 %v4627_v49, %v4627_v49  ;;  %v4509_v55 = vpop.f32.mrb[10].mxu0 }
 0x1e8   : > { %v4628_v56 = vadd.f32 %v4509_v55, %v5890_v59  ;;  %v3183_v17 = vpop.f32.mrb[11].mxu0 }
 0x1e9   : > { %v4589_v57 = vpack.c.bf16 %v5953_v51, %v5956_v54  ;;  %v4629_v37 = vadd.f32 %v3183_v17, %v5892_v60  ;;  %4548 = vmatpush1.bf16.msra.mxu1 %v4547_v53 }
 0x1ea   : > { %v5962_v39 = vmul.f32 %v4628_v56, %v4628_v56  ;;  %4549 = vmatprep.subr.bf16.mxu1 %v4984_v28 }
 0x1eb   : > { %v4550_v58 = vpack.c.bf16 %v4628_v56, %v4629_v37  ;;  %v5965_v8 = vmul.f32 %v4629_v37, %v4629_v37  ;;  %v4512_v12 = vpop.f32.mrb[12].mxu0 }
 0x1ec   : > { %v4630_v14 = vadd.f32 %v4512_v12, %v5894_v61  ;;  %v3193_v15 = vpop.f32.mrb[13].mxu0 }
 0x1ed   : > { %v4592_v59 = vpack.c.bf16 %v5962_v39, %v5965_v8  ;;  %v4631_v20 = vadd.f32 %v3193_v15, %v5896_v62  ;;  %4551 = vmatpush1.bf16.msra.mxu1 %v4550_v58 }
 0x1ee   : > { %v5971_v42 = vmul.f32 %v4630_v14, %v4630_v14  ;;  %4552 = vmatprep.subr.bf16.mxu1 %v4984_v28 }
 0x1ef   : > { %v4553_v60 = vpack.c.bf16 %v4630_v14, %v4631_v20  ;;  %v5974_v44 = vmul.f32 %v4631_v20, %v4631_v20  ;;  %v4515_v48 = vpop.f32.mrb[14].mxu0 }
 0x1f0   : > { %v4632_v50 = vadd.f32 %v4515_v48, %v5898_v63  ;;  %v3203_v35 = vpop.f32.mrb[15].mxu0 }
 0x1f1   : > { %v4595_v61 = vpack.c.bf16 %v5971_v42, %v5974_v44  ;;  %v4633_v31 = vadd.f32 %v3203_v35, %v5900_v0  ;;  %4554 = vmatpush1.bf16.msra.mxu1 %v4553_v60 }
 0x1f2   : > { %v5980_v29 = vmul.f32 %v4632_v50, %v4632_v50  ;;  %4555 = vmatprep.subr.bf16.mxu1 %v4984_v28 }
 0x1f3   : > { %v4556_v62 = vpack.c.bf16 %v4632_v50, %v4633_v31  ;;  %v5983_v25 = vmul.f32 %v4633_v31, %v4633_v31  ;;  %v4518_v23 = vpop.f32.mrb[16].mxu0 }
 0x1f4   : > { %v4634_v19 = vadd.f32 %v4518_v23, %v5902_v1  ;;  %v3213_v30 = vpop.f32.mrb[17].mxu0 }
 0x1f5   : > { %v4598_v63 = vpack.c.bf16 %v5980_v29, %v5983_v25  ;;  %v4635_v24 = vadd.f32 %v3213_v30, %v5904_v2  ;;  %4557 = vmatpush1.bf16.msra.mxu1 %v4556_v62 }
 0x1f6   : > { %v5989_v22 = vmul.f32 %v4634_v19, %v4634_v19  ;;  %4558 = vmatprep.subr.bf16.mxu1 %v4984_v28 }
 0x1f7   : > { %v4559_v0 = vpack.c.bf16 %v4634_v19, %v4635_v24  ;;  %v5992_v34 = vmul.f32 %v4635_v24, %v4635_v24  ;;  %v4521_v45 = vpop.f32.mrb[18].mxu0 }
 0x1f8   : > { %v4636_v49 = vadd.f32 %v4521_v45, %v5906_v3  ;;  %v3223_v53 = vpop.f32.mrb[19].mxu0 }
 0x1f9   : > { %v4601_v1 = vpack.c.bf16 %v5989_v22, %v5992_v34  ;;  %v4637_v55 = vadd.f32 %v3223_v53, %v5908_v4  ;;  %4560 = vmatpush1.bf16.msra.mxu1 %v4559_v0 }
 0x1fa   : > { %v5998_v56 = vmul.f32 %v4636_v49, %v4636_v49  ;;  %4561 = vmatprep.subr.bf16.mxu1 %v4984_v28 }
 0x1fb   : > { %v4562_v2 = vpack.c.bf16 %v4636_v49, %v4637_v55  ;;  %v6001_v17 = vmul.f32 %v4637_v55, %v4637_v55  ;;  %v4524_v37 = vpop.f32.mrb[20].mxu0 }
 0x1fc   : > { %v4638_v58 = vadd.f32 %v4524_v37, %v5910_v5  ;;  %v3233_v12 = vpop.f32.mrb[21].mxu0 }
 0x1fd   : > { %v4604_v3 = vpack.c.bf16 %v5998_v56, %v6001_v17  ;;  %v4639_v14 = vadd.f32 %v3233_v12, %v5912_v6  ;;  %4563 = vmatpush1.bf16.msra.mxu1 %v4562_v2 }
 0x1fe   : > { %v3406_v15 = vmul.f32 %v4638_v58, %v4638_v58  ;;  %4564 = vmatprep.subr.bf16.mxu1 %v4984_v28 }
 0x1ff   : > { %v4565_v4 = vpack.c.bf16 %v4638_v58, %v4639_v14  ;;  %v3405_v20 = vmul.f32 %v4639_v14, %v4639_v14  ;;  %v4527_v60 = vpop.f32.mrb[22].mxu0 }
 0x200   : > { %v4640_v48 = vadd.f32 %v4527_v60, %v5914_v7  ;;  %v3243_v50 = vpop.f32.mrb[23].mxu0 }
 0x201   : > { %v4607_v35 = vpack.c.bf16 %v3406_v15, %v3405_v20  ;;  %v4641_v31 = vadd.f32 %v3243_v50, %v5916_v9  ;;  %4566 = vmatpush1.bf16.msra.mxu1 %v4565_v4 }
 0x202   : > { %v3408_v5 = vmul.f32 %v4640_v48, %v4640_v48  ;;  %4567 = vmatprep.subr.bf16.mxu1 %v4984_v28 }
 0x203   : > { %v4568_v62 = vpack.c.bf16 %v4640_v48, %v4641_v31  ;;  %v3407_v23 = vmul.f32 %v4641_v31, %v4641_v31  ;;  %v4530_v6 = vpop.f32.mrb[24].mxu0 }
 0x204   : > { %v4642_v19 = vadd.f32 %v4530_v6, %v5918_v10  ;;  %v3253_v30 = vpop.f32.mrb[25].mxu0 }
 0x205   : > { %v4610_v24 = vpack.c.bf16 %v3408_v5, %v3407_v23  ;;  %v4643_v0 = vadd.f32 %v3253_v30, %v5920_v36  ;;  %4569 = vmatpush1.bf16.msra.mxu1 %v4568_v62 }
 0x206   : > { %v3410_v45 = vmul.f32 %v4642_v19, %v4642_v19  ;;  %4570 = vmatprep.subr.bf16.mxu1 %v4984_v28 }
 0x207   : > { %v4571_v7 = vpack.c.bf16 %v4642_v19, %v4643_v0  ;;  %v3409_v49 = vmul.f32 %v4643_v0, %v4643_v0  ;;  %v4533_v9 = vpop.f32.mrb[26].mxu0 }
 0x208   : > { %v4644_v53 = vadd.f32 %v4533_v9, %v5922_v38  ;;  %v3263_v55 = vpop.f32.mrb[27].mxu0 }
 0x209   : > { %v4613_v56 = vpack.c.bf16 %v3410_v45, %v3409_v49  ;;  %v4645_v2 = vadd.f32 %v3263_v55, %v5924_v16  ;;  %4572 = vmatpush1.bf16.msra.mxu1 %v4571_v7 }
 0x20a   : > { %v3412_v17 = vmul.f32 %v4644_v53, %v4644_v53  ;;  %4573 = vmatprep.subr.bf16.mxu1 %v4984_v28 }
 0x20b   : > { %v4574_v10 = vpack.c.bf16 %v4644_v53, %v4645_v2  ;;  %v3411_v37 = vmul.f32 %v4645_v2, %v4645_v2 }
 0x20d   : > { %v4616_v36 = vpack.c.bf16 %v3412_v17, %v3411_v37  ;;  %4575 = vmatpush1.bf16.msra.mxu1 %v4574_v10 }
 0x20e   : > { %4576 = vmatprep.subr.bf16.mxu1 %v4984_v28 }
 0x210   : > { %3379 = vmatmul.mubr.f32.vlgmr.msra.gmra.mrb[28].mxu1 %v5886_v18 }
 0x211   : > { %4578 = vmatpush1.bf16.msra.mxu1 %v4577_v40  ;;  %3872 = vmatprep.mubr.msk.f32.mxu1 %vm3311_vm2, %v5884_v41 }
 0x212   : > { %4579 = vmatprep.subr.bf16.mxu1 %v4984_v28 }
 0x215   : > { %4581 = vmatpush1.bf16.msra.mxu1 %v4580_v33 }
 0x216   : > { %4582 = vmatprep.subr.bf16.mxu1 %v4984_v28 }
 0x219   : > { %4584 = vmatpush1.bf16.msra.mxu1 %v4583_v21 }
 0x21a   : > { %4585 = vmatprep.subr.bf16.mxu1 %v4984_v28 }
 0x21d   : > { %4587 = vmatpush1.bf16.msra.mxu1 %v4586_v47 }
 0x21e   : > { %4588 = vmatprep.subr.bf16.mxu1 %v4984_v28 }
 0x221   : > { %4590 = vmatpush1.bf16.msra.mxu1 %v4589_v57 }
 0x222   : > { %4591 = vmatprep.subr.bf16.mxu1 %v4984_v28 }
 0x225   : > { %4593 = vmatpush1.bf16.msra.mxu1 %v4592_v59 }
 0x226   : > { %4594 = vmatprep.subr.bf16.mxu1 %v4984_v28 }
 0x229   : > { %4596 = vmatpush1.bf16.msra.mxu1 %v4595_v61 }
 0x22a   : > { %4597 = vmatprep.subr.bf16.mxu1 %v4984_v28 }
 0x22d   : > { %4599 = vmatpush1.bf16.msra.mxu1 %v4598_v63 }
 0x22e   : > { %4600 = vmatprep.subr.bf16.mxu1 %v4984_v28 }
 0x231   : > { %4602 = vmatpush1.bf16.msra.mxu1 %v4601_v1 }
 0x232   : > { %4603 = vmatprep.subr.bf16.mxu1 %v4984_v28 }
 0x235   : > { %4605 = vmatpush1.bf16.msra.mxu1 %v4604_v3 }
 0x236   : > { %4606 = vmatprep.subr.bf16.mxu1 %v4984_v28 }
 0x239   : > { %4608 = vmatpush1.bf16.msra.mxu1 %v4607_v35 }
 0x23a   : > { %4609 = vmatprep.subr.bf16.mxu1 %v4984_v28 }
 0x23d   : > { %4611 = vmatpush1.bf16.msra.mxu1 %v4610_v24 }
 0x23e   : > { %4612 = vmatprep.subr.bf16.mxu1 %v4984_v28 }
 0x241   : > { %4614 = vmatpush1.bf16.msra.mxu1 %v4613_v56 }
 0x242   : > { %4615 = vmatprep.subr.bf16.mxu1 %v4984_v28 }
 0x245   : > { %4617 = vmatpush1.bf16.msra.mxu1 %v4616_v36 }
 0x248   : > { %3478 = vmatmul.mubr.f32.vlgmr.msra.gmra.mrb[30].mxu1 %v5886_v18 }
 0x2e3   : > { %v3380_v28 = vpop.f32.mrb[28].mxu1 }
 0x2e4   : > { %3384 = vst [vmem:[%s193_s10] sm:$0x1] %v3380_v28  ;;  %v3382_v41 = vpop.f32.mrb[29].mxu1 }
 0x2e5   : > { %4901 = shalt.err (!%p4898_p3)
}
 0x2e6   : > { %s4902_s30 = scalar_lea.hbm %s6074_s20, 16  ;;  %s4906_s7 = scalar_lea.hbm %s6150_s3, 32 }
 0x2e7   : > { %p4903_p4 = scmp.ne.s32.totalorder %s6074_s20, %s4902_s30  ;;  %p4907_p9 = scmp.lt.u32.totalorder %s6074_s20, %s6150_s3 }
 0x2e8   : > { %p4908_p10 = scmp.lt.u32.totalorder %s4906_s7, %s4902_s30  ;;  %p4910_p12 = scmp.lt.u32.totalorder %s4902_s30, %s6074_s20 }
 0x2e9   : > { %p4904_p7 = pnand %p4903_p4, %p5050_p5 }
 0x2ea   : > { %p4909_p11 = por %p4908_p10, %p4907_p9 }
 0x2eb   : > { %p4905_p8 = pneg %p4904_p7 }
 0x2ec   : > { %p4911_p13 = por %p4910_p12, %p4909_p11 }
 0x2ee   : > { %p4912_p0 = pnand %p4911_p13, %p4905_p8 }
 0x2f0   : > { %4915 = shalt.err (!%p4912_p0)
}
 0x2f1   : > { %4843 = dma.vmem_to_hbm [thread:$0]  (%p5050_p5), %s6067_s11, 16, %s6074_s20, %s3485_s22  }
 0x2f2   : > { %s199_s13 = scalar_lea.vmem [#allocation4], %s6063_s9  ;;  %s6106_s28 = scalar_lea.hbm %s6151_s4, %s3873_s12 }
 0x2f3   : > { %s3514_s14 = sshll.u32 %s199_s13, 4  ;;  %s3489_s29 = scalar_lea.sflag [#allocation5], %s6063_s9  ;;  %s6099_s14 = int_to_ptr.vmem [resolvable:$true] %s3514_s14 }
 0x2f4   : > { %s4916_s30 = scalar_lea.vmem %s6099_s14, 16  ;;  %s4986_s11 = smov [#allocation4]  }
 0x2f5   : > { %p4917_p1 = scmp.ne.s32.totalorder %s6099_s14, %s4916_s30  ;;  %s4920_s20 = sshll.u32 %s4986_s11, 4  ;;  %s4921_s20 = int_to_ptr.vmem [resolvable:$false] %s4920_s20 }
 0x2f6   : > { %s4922_s19 = scalar_lea.vmem %s4921_s20, 32  ;;  %p4923_p4 = scmp.lt.s32.totalorder %s6099_s14, %s4921_s20 }
 0x2f7   : > { %p4918_p2 = pnand %p4917_p1, %p5050_p5  ;;  %p4924_p7 = scmp.lt.s32.totalorder %s4922_s19, %s4916_s30 }
 0x2f9   : > { %p4919_p3 = pneg %p4918_p2  ;;  %p4925_p8 = por %p4924_p7, %p4923_p4 }
 0x2fb   : > { %p4926_p9 = pnand %p4925_p8, %p4919_p3 }
 0x31b   : > { %v3479_v18 = vpop.f32.mrb[30].mxu1 }
 0x31c   : > { %3483 = vst [vmem:[%s199_s13] sm:$0x1] %v3479_v18  ;;  %v3481_v38 = vpop.f32.mrb[31].mxu1 }
 0x31d   : > { %4929 = shalt.err (!%p4926_p9)
}
 0x31e   : > { %s4930_s9 = scalar_lea.hbm %s6106_s28, 16  ;;  %s4934_s5 = scalar_lea.hbm %s6151_s4, 32 }
 0x31f   : > { %p4931_p10 = scmp.ne.s32.totalorder %s6106_s28, %s4930_s9  ;;  %p4935_p13 = scmp.lt.u32.totalorder %s6106_s28, %s6151_s4 }
 0x320   : > { %p4936_p0 = scmp.lt.u32.totalorder %s4934_s5, %s4930_s9  ;;  %p4938_p2 = scmp.lt.u32.totalorder %s4930_s9, %s6106_s28 }
 0x321   : > { %p4932_p11 = pnand %p4931_p10, %p5050_p5 }
 0x322   : > { %p4937_p1 = por %p4936_p0, %p4935_p13 }
 0x323   : > { %p4933_p12 = pneg %p4932_p11 }
 0x324   : > { %p4939_p3 = por %p4938_p2, %p4937_p1 }
 0x326   : > { %p4940_p4 = pnand %p4939_p3, %p4933_p12 }
 0x328   : > { %4943 = shalt.err (!%p4940_p4)
}
 0x329   : > { %4844 = dma.vmem_to_hbm [thread:$0]  (%p5050_p5), %s6099_s14, 16, %s6106_s28, %s3489_s29  }
 0x32a PF: > { %p4854_p7 = scmp.ge.s32.totalorder %s4982_s18, 2  ;;  %s3526_s8 = sand.u32 1, %s4970_s15  }
 0x32b   : > { %s3527_s10 = scalar_lea.sflag [#allocation3], %s3526_s8 }
 0x32c   : > { %p4848_p8 = pnand %p4854_p7, %p5054_p6 }
 0x32e   : > { %4961 = dma.done.wait (!%p4848_p8), %s3527_s10, 16  }
 0x32f   : > { %4963 = vsyncadd (!%p4848_p8), %s3527_s10, 4294967280  ;;  %s3535_s13 = scalar_lea.sflag [#allocation5], %s3526_s8 }
 0x330   : > { %4965 = dma.done.wait (!%p4848_p8), %s3535_s13, 16  }
 0x331   : > { %4967 = vsyncadd (!%p4848_p8), %s3535_s13, 4294967280  ;;  %p18_p5 = scmp.ge.s32.totalorder %s5037_s21, 4   ;;  %s6217_s15 = smov %s4974_s16 }
 0x332   : > { %s6218_s16 = smov %s4978_s17  ;;  %s6219_s17 = smov %s5048_s24 }
 0x333   : > { %s6220_s18 = smov %s5037_s21  ;;  %20 = sbr.rel (!%p18_p5) target bundleno = 5 (0x5), region = 92 }
 0x33a   :  { %3539 = vsyncpa [#allocation3], 1 }
 0x33b   :  { %3541 = vsyncpa [#allocation3 + $0x1], 1 }
 0x33c   :  { %3542 = vsyncpa [#allocation5], 1 }
 0x33d   :  { %3544 = vsyncpa [#allocation5 + $0x1], 1 }

</bundles_post_ra>
